<compile_context>
chip_gen: v7x
topology: tpu7x:2x2x1
jax: 0.10.0
libtpu: 0.0.40
codegen_flags: <defaults>
</compile_context>

<pallas_src>
import jax
import jax.numpy as jnp
from jax import lax
from jax.experimental import pallas as pl
from jax.experimental.pallas import tpu as pltpu

HIDDEN = 128
NSLOT = 6                    # time, buffer, viewport[0], viewport[1], bandwidth[0], bandwidth[1]
NSLOT_PAD = 8                # pad feature columns to 8 for a clean layout
INCOMING = NSLOT * HIDDEN    # 768


def critic_kernel(f_ref, wsel_ref, bs_ref, w1_ref, b1_ref, w3_ref, b3_ref, out_ref):
    f = f_ref[...]                                         # [TB, 8] f32 (cols 0..5 used)

    # All six ReLU(affine) branches at once: K=8 selection matmul folds the per-slot
    # branch weights and the lane replication into a single MXU pass.
    act = jnp.maximum(
        jnp.dot(f, wsel_ref[...], preferred_element_type=jnp.float32) + bs_ref[...],
        0.0)                                               # [TB, 768] f32

    # fc1: cast activations to the (bf16) weight dtype at the dot, accumulate in f32.
    h = jnp.maximum(
        jnp.dot(act.astype(w1_ref.dtype), w1_ref[...],
                preferred_element_type=jnp.float32) + b1_ref[...],
        0.0)                                               # [TB, 128] f32

    # fc3: contract the 128 hidden lanes, producing a lane-dense [1, TB] row so the
    # kernel's output stores are full-lane / unmasked.
    r = lax.dot_general(w3_ref[...], h.astype(w3_ref.dtype),
                        (((1,), (1,)), ((), ())),
                        preferred_element_type=jnp.float32)   # [1, TB]
    out_ref[...] = r + b3_ref[0]


def init_params(key):
    """Deterministic synthetic parameters with the same shapes as the torch module."""
    ks = jax.random.split(key, 12)
    n = lambda k, shape, scale=0.1: scale * jax.random.normal(k, shape, jnp.float32)
    return {
        "fc_1_w": n(ks[0], (HIDDEN, 1)),   "fc_1_b": n(ks[1], (HIDDEN,)),
        "fc_2_w": n(ks[2], (HIDDEN, 1)),   "fc_2_b": n(ks[3], (HIDDEN,)),
        "conv1_w": n(ks[4], (HIDDEN, 1, 1)), "conv1_b": n(ks[5], (HIDDEN,)),
        "conv2_w": n(ks[6], (HIDDEN, 1, 1)), "conv2_b": n(ks[7], (HIDDEN,)),
        "fc1_w": n(ks[8], (HIDDEN, INCOMING)), "fc1_b": n(ks[9], (HIDDEN,)),
        "fc3_w": n(ks[10], (1, HIDDEN)),   "fc3_b": n(ks[11], (1,)),
    }


def pack_params(p, matmul_dtype=jnp.bfloat16):
    """One-time packing of torch-shaped params into kernel operands.

    Hoisted out of the per-call path: call once at init and reuse the result for
    every forward.  `matmul_dtype` sets the fc1/fc3 MXU-input dtype (bf16 is the
    sweet spot on v5e/v6e/v7x; use f32 for tight-tolerance validation)."""
    c1 = p["conv1_w"][:, 0, 0]
    c2 = p["conv2_w"][:, 0, 0]
    # Slot order: x1(time), x2(buffer), x3@pos0, x3@pos1, x4@pos0, x4@pos1.
    ws = jnp.concatenate([p["fc_1_w"][:, 0], p["fc_2_w"][:, 0], c1, c1, c2, c2])      # [768]
    bs = jnp.concatenate([p["fc_1_b"], p["fc_2_b"],
                          p["conv1_b"], p["conv1_b"],
                          p["conv2_b"], p["conv2_b"]])[None, :].astype(jnp.float32)   # [1,768]

    # Selection matrix: Wsel[s, s*128:(s+1)*128] = ws of slot s; pad rows 6..7 zero.
    col_slot = jnp.repeat(jnp.arange(NSLOT), HIDDEN)                                   # [768]
    wsel = jnp.where(jnp.arange(NSLOT_PAD)[:, None] == col_slot[None, :],
                     ws[None, :], 0.0).astype(jnp.float32)                             # [8,768]

    # De-interleave torch's channel-major conv flatten (col = base + 2*channel + pos)
    # into slot-major order matching `act` above.
    w1t = p["fc1_w"].T                                                                  # [768,128]
    w1 = jnp.concatenate([
        w1t[0:128],            # x_1 (time branch)
        w1t[128:256],          # x_2 (buffer branch)
        w1t[256:512:2],        # x_3, position 0
        w1t[257:512:2],        # x_3, position 1
        w1t[512:768:2],        # x_4, position 0
        w1t[513:768:2],        # x_4, position 1
    ], axis=0).astype(matmul_dtype)                                                     # [768,128]
    b1 = p["fc1_b"][None, :].astype(jnp.float32)                                        # [1,128]
    w3 = p["fc3_w"].astype(matmul_dtype)                                                # [1,128]
    b3 = p["fc3_b"].astype(jnp.float32)                                                 # [1] (SMEM)
    return wsel, bs, w1, b1, w3, b3


def _round_up(a, m):
    return ((a + m - 1) // m) * m


def _choose_tile(B, tb_max):
    """Pick (tile, padded_batch).  B<=128: one 128-row step (splitting smaller costs
    more in per-step overhead than a second core recovers).  B>128: big tile to
    amortize the ~0.35 us/step overhead, but keep an EVEN number of >=2 steps so
    the 'parallel' axis can shard across v7x's two TensorCores."""
    if B <= 128:
        return 128, 128
    tb = max(128, min(tb_max, _round_up(-(-B // 2), 128)))
    steps = _round_up(-(-B // tb), 2)
    return tb, steps * tb


def critic_forward(inputs, packed_params, *, tb_max=1024):
    wsel, bs, w1, b1, w3, b3 = packed_params
    B, C, L = inputs.shape
    assert C >= 4 and L >= 2

    # Consolidated feature gather: two contiguous slices instead of six scalar gathers.
    feats = jnp.concatenate(
        [inputs[:, 0:2, L - 1],                   # time, buffer (last step)        [B,2]
         inputs[:, 2:4, 0:2].reshape(B, 4)],      # vp@0, vp@1, bw@0, bw@1          [B,4]
        axis=1).astype(jnp.float32)               # [B,6]

    tb, bp = _choose_tile(B, tb_max)
    feats = jnp.pad(feats, ((0, bp - B), (0, NSLOT_PAD - NSLOT)))   # [bp, 8]

    out = pl.pallas_call(
        critic_kernel,
        out_shape=jax.ShapeDtypeStruct((1, bp), jnp.float32),        # lane-dense slab
        grid=(bp // tb,),
        in_specs=[
            pl.BlockSpec((tb, NSLOT_PAD), lambda i: (i, 0)),         # gathered features
            pl.BlockSpec((NSLOT_PAD, INCOMING), lambda i: (0, 0)),   # selection matrix [8,768]
            pl.BlockSpec((1, INCOMING), lambda i: (0, 0)),           # branch biases    [1,768]
            pl.BlockSpec((INCOMING, HIDDEN), lambda i: (0, 0)),      # fused fc1 weight
            pl.BlockSpec((1, HIDDEN), lambda i: (0, 0)),             # fc1 bias
            pl.BlockSpec((1, HIDDEN), lambda i: (0, 0)),             # fc3 weight row
            pl.BlockSpec(memory_space=pltpu.MemorySpace.SMEM),       # fc3 bias scalar
        ],
        out_specs=pl.BlockSpec((1, tb), lambda i: (0, i)),
        compiler_params=pltpu.CompilerParams(dimension_semantics=("parallel",)),
    )(feats, wsel, bs, w1, b1, w3, b3)
    return out[0, :B][:, None]                                       # [B, 1]


def critic_reference(inputs, p):
    """Pure-JAX transcription of the torch forward (for verification)."""
    time = inputs[:, 0:1, -1]                      # [B,1]
    buf = inputs[:, 1:2, -1]                       # [B,1]
    vp = inputs[:, 2, :2]                          # [B,2]
    bw = inputs[:, 3, :2]                          # [B,2]
    relu = jax.nn.relu
    x1 = relu(time @ p["fc_1_w"].T + p["fc_1_b"])  # [B,128]
    x2 = relu(buf @ p["fc_2_w"].T + p["fc_2_b"])   # [B,128]
    # Conv1d(1,128,1): out[b,o,l] = w[o,0,0] * x[b,0,l] + bias[o]  -> [B,128,2]
    x3 = relu(vp[:, None, :] * p["conv1_w"][None, :, 0, 0:1] + p["conv1_b"][None, :, None])
    x4 = relu(bw[:, None, :] * p["conv2_w"][None, :, 0, 0:1] + p["conv2_b"][None, :, None])
    x3 = x3.reshape(inputs.shape[0], -1)           # channel-major flatten [B,256]
    x4 = x4.reshape(inputs.shape[0], -1)
    z = jnp.concatenate([x1, x2, x3, x4], axis=1)  # [B,768]
    h = relu(z @ p["fc1_w"].T + p["fc1_b"])
    return h @ p["fc3_w"].T + p["fc3_b"]           # [B,1]


if __name__ == "__main__":
    B, C, L = 4, 4, 8                              # module uses channels 0..3, seq >= 2
    x = jax.random.normal(jax.random.PRNGKey(0), (B, C, L), jnp.float32)
    params = init_params(jax.random.PRNGKey(42))
    ref = critic_reference(x, params)

    # Default (bf16 MXU inputs, f32 accumulation) — the recommended config on
    # v5e / v6e / v7x once batches are matmul-bound.
    packed_bf16 = pack_params(params, jnp.bfloat16)
    out_bf16 = jax.block_until_ready(critic_forward(x, packed_bf16))
    assert out_bf16.shape == (B, 1)
    assert jnp.allclose(out_bf16, ref, atol=3e-2, rtol=3e-2), (out_bf16, ref)

    # Full-f32 matmul inputs for tight-tolerance validation of the kernel structure.
    packed_f32 = pack_params(params, jnp.float32)
    out_f32 = jax.block_until_ready(critic_forward(x, packed_f32))
    assert out_f32.shape == (B, 1)
    assert jnp.allclose(out_f32, ref, atol=1e-4, rtol=1e-4), (out_f32, ref)

    print("KERNEL_OK")
</pallas_src>

<mosaic_0001>
module attributes {stable_mosaic.version = 11 : i64} {
  func.func @critic_kernel(%arg0: i32, %arg1: memref<128x8xf32, #tpu.memory_space<vmem>>, %arg2: memref<8x768xf32, #tpu.memory_space<vmem>>, %arg3: memref<1x768xf32, #tpu.memory_space<vmem>>, %arg4: memref<768x128xbf16, #tpu.memory_space<vmem>>, %arg5: memref<1x128xf32, #tpu.memory_space<vmem>>, %arg6: memref<1x128xbf16, #tpu.memory_space<vmem>>, %arg7: memref<1xf32, #tpu.memory_space<smem>>, %arg8: memref<1x128xf32, #tpu.memory_space<vmem>>) attributes {dimension_semantics = [#tpu.dimension_semantics<parallel>], iteration_bounds = array<i64: 1>, scalar_prefetch = 0 : i64, scratch_operands = 0 : i64, tpu.core_type = #tpu.core_type<tc>, window_params = [{transform_indices = @transform_0, window_bounds = array<i64: 128, 8>}, {pipeline_mode = #tpu.pipeline_mode<synchronous>, transform_indices = @transform_1, window_bounds = array<i64: 8, 768>}, {pipeline_mode = #tpu.pipeline_mode<synchronous>, transform_indices = @transform_2, window_bounds = array<i64: 1, 768>}, {pipeline_mode = #tpu.pipeline_mode<synchronous>, transform_indices = @transform_3, window_bounds = array<i64: 768, 128>}, {pipeline_mode = #tpu.pipeline_mode<synchronous>, transform_indices = @transform_4, window_bounds = array<i64: 1, 128>}, {pipeline_mode = #tpu.pipeline_mode<synchronous>, transform_indices = @transform_5, window_bounds = array<i64: 1, 128>}, {transform_indices = @transform_6, window_bounds = array<i64: 1>}, {transform_indices = @transform_7, window_bounds = array<i64: 1, 128>}]} {
    %c0 = arith.constant 0 : index
    %c0_0 = arith.constant 0 : index
    %0 = vector.load %arg1[%c0, %c0_0] : memref<128x8xf32, #tpu.memory_space<vmem>>, vector<128x8xf32>
    %c0_1 = arith.constant 0 : index
    %c0_2 = arith.constant 0 : index
    %1 = vector.load %arg2[%c0_1, %c0_2] : memref<8x768xf32, #tpu.memory_space<vmem>>, vector<8x768xf32>
    %cst = arith.constant dense<0.000000e+00> : vector<128x768xf32>
    %2 = tpu.matmul %0, %1, %cst {dimension_numbers = #tpu.dot_dimension_numbers<[1], [0], [0], [1], [0, 0, 1, 1], [], []>} : vector<128x8xf32>, vector<8x768xf32>, vector<128x768xf32> -> vector<128x768xf32>
    %c0_3 = arith.constant 0 : index
    %c0_4 = arith.constant 0 : index
    %3 = vector.load %arg3[%c0_3, %c0_4] : memref<1x768xf32, #tpu.memory_space<vmem>>, vector<1x768xf32>
    %4 = vector.broadcast %3 : vector<1x768xf32> to vector<128x768xf32>
    %5 = arith.addf %2, %4 : vector<128x768xf32>
    %cst_5 = arith.constant 0.000000e+00 : f32
    %6 = vector.broadcast %cst_5 : f32 to vector<128x768xf32>
    %7 = arith.maximumf %5, %6 : vector<128x768xf32>
    %8 = arith.truncf %7 : vector<128x768xf32> to vector<128x768xbf16>
    %c0_6 = arith.constant 0 : index
    %c0_7 = arith.constant 0 : index
    %9 = vector.load %arg4[%c0_6, %c0_7] : memref<768x128xbf16, #tpu.memory_space<vmem>>, vector<768x128xbf16>
    %cst_8 = arith.constant dense<0.000000e+00> : vector<128x128xf32>
    %10 = tpu.matmul %8, %9, %cst_8 {dimension_numbers = #tpu.dot_dimension_numbers<[1], [0], [0], [1], [0, 0, 1, 1], [], []>} : vector<128x768xbf16>, vector<768x128xbf16>, vector<128x128xf32> -> vector<128x128xf32>
    %c0_9 = arith.constant 0 : index
    %c0_10 = arith.constant 0 : index
    %11 = vector.load %arg5[%c0_9, %c0_10] : memref<1x128xf32, #tpu.memory_space<vmem>>, vector<1x128xf32>
    %12 = vector.broadcast %11 : vector<1x128xf32> to vector<128x128xf32>
    %13 = arith.addf %10, %12 : vector<128x128xf32>
    %cst_11 = arith.constant 0.000000e+00 : f32
    %14 = vector.broadcast %cst_11 : f32 to vector<128x128xf32>
    %15 = arith.maximumf %13, %14 : vector<128x128xf32>
    %c0_12 = arith.constant 0 : index
    %c0_13 = arith.constant 0 : index
    %16 = vector.load %arg6[%c0_12, %c0_13] : memref<1x128xbf16, #tpu.memory_space<vmem>>, vector<1x128xbf16>
    %17 = arith.truncf %15 : vector<128x128xf32> to vector<128x128xbf16>
    %cst_14 = arith.constant dense<0.000000e+00> : vector<1x128xf32>
    %18 = tpu.matmul %16, %17, %cst_14 {dimension_numbers = #tpu.dot_dimension_numbers<[1], [1], [0], [0], [0, 0, 1, 0], [], []>} : vector<1x128xbf16>, vector<128x128xbf16>, vector<1x128xf32> -> vector<1x128xf32>
    %c0_15 = arith.constant 0 : index
    %19 = memref.load %arg7[%c0_15] : memref<1xf32, #tpu.memory_space<smem>>
    %20 = vector.broadcast %19 : f32 to vector<1x128xf32>
    %21 = arith.addf %18, %20 : vector<1x128xf32>
    %c0_16 = arith.constant 0 : index
    %c0_17 = arith.constant 0 : index
    %22 = vector.load %arg8[%c0_16, %c0_17] : memref<1x128xf32, #tpu.memory_space<vmem>>, vector<1x128xf32>
    tpu.vector_store %arg8[%c0_16, %c0_17], %21 {strides = array<i32>} : memref<1x128xf32, #tpu.memory_space<vmem>>, vector<1x128xf32>,
    return
  }
  func.func @transform_0(%arg0: i32) -> (i32, i32) {
    %c0_i32 = arith.constant 0 : i32
    %c0_i32_0 = arith.constant 0 : i32
    return %arg0, %c0_i32 : i32, i32
  }
  func.func @transform_1(%arg0: i32) -> (i32, i32) {
    %c0_i32 = arith.constant 0 : i32
    %c0_i32_0 = arith.constant 0 : i32
    %c0_i32_1 = arith.constant 0 : i32
    return %c0_i32, %c0_i32_0 : i32, i32
  }
  func.func @transform_2(%arg0: i32) -> (i32, i32) {
    %c0_i32 = arith.constant 0 : i32
    %c0_i32_0 = arith.constant 0 : i32
    %c0_i32_1 = arith.constant 0 : i32
    return %c0_i32, %c0_i32_0 : i32, i32
  }
  func.func @transform_3(%arg0: i32) -> (i32, i32) {
    %c0_i32 = arith.constant 0 : i32
    %c0_i32_0 = arith.constant 0 : i32
    %c0_i32_1 = arith.constant 0 : i32
    return %c0_i32, %c0_i32_0 : i32, i32
  }
  func.func @transform_4(%arg0: i32) -> (i32, i32) {
    %c0_i32 = arith.constant 0 : i32
    %c0_i32_0 = arith.constant 0 : i32
    %c0_i32_1 = arith.constant 0 : i32
    return %c0_i32, %c0_i32_0 : i32, i32
  }
  func.func @transform_5(%arg0: i32) -> (i32, i32) {
    %c0_i32 = arith.constant 0 : i32
    %c0_i32_0 = arith.constant 0 : i32
    %c0_i32_1 = arith.constant 0 : i32
    return %c0_i32, %c0_i32_0 : i32, i32
  }
  func.func @transform_6(%arg0: i32) -> i32 {
    %c0_i32 = arith.constant 0 : i32
    %c0_i32_0 = arith.constant 0 : i32
    return %c0_i32 : i32
  }
  func.func @transform_7(%arg0: i32) -> (i32, i32) {
    %c0_i32 = arith.constant 0 : i32
    %c0_i32_0 = arith.constant 0 : i32
    return %c0_i32, %arg0 : i32, i32
  }
}

</mosaic_0001>

<bundles_post_ra>
// kernel: tpu_custom_call.1
= control target key start
LH: loop header
LB: loop body
LE: loop exit
PB: predicated region body
PF: predicated region fallthrough
CT: control target
= control target key end

     0   :  { %13 = vsyncpa [#allocation4], 0  ;;  %s2489_s0 = inlined_call_operand.vmem [shape: f32[128,8], index: 0, kind: input, shape index: {}]   ;;  %s2490_s1 = inlined_call_operand.vmem [shape: f32[8,768], index: 1, kind: input, shape index: {}]   ;;  %s2491_s2 = inlined_call_operand.vmem [shape: f32[1,768], index: 2, kind: input, shape index: {}]   ;;  %s2492_s3 = inlined_call_operand.hbm [shape: bf16[768,128], index: 3, kind: input, shape index: {}]   ;;  %s2493_s4 = inlined_call_operand.vmem [shape: f32[1,128], index: 4, kind: input, shape index: {}]   ;;  %s2494_s5 = inlined_call_operand.vmem [shape: bf16[1,128], index: 5, kind: input, shape index: {}]   ;;  %s2495_s6 = inlined_call_operand.<no memory space> [shape: f32[1], index: 6, kind: input, shape index: {}]   ;;  %s2496_s7 = inlined_call_operand.hbm [shape: f32[1,128], index: 7, kind: output, shape index: {}]  }
   0x1   :  { %14 = vsyncpa [#allocation5], 0  ;;  %s1960_s24 = smov [#allocation3]   ;;  %s1912_s28 = scalar_lea.hbm %s2492_s3, 6144 }
   0x2   :  { %s26_s25 = sshll.u32 %s1960_s24, 4  ;;  %p1913_p0 = scmp.ne.s32.totalorder %s2492_s3, %s1912_s28  ;;  %s27_s25 = int_to_ptr.vmem [resolvable:$true] %s26_s25 }
   0x3   :  { %p1916_p1 = scmp.lt.u32.totalorder %s1912_s28, %s2492_s3 }
   0x5   :  { %p1918_p2 = pnand %p1916_p1, %p1913_p0 }
   0x7   :  { %1921 = shalt.err (!%p1918_p2)
}
   0x8   :  { %s1922_s10 = scalar_lea.vmem %s27_s25, 6144  ;;  %p1927_p4 = scmp.lt.s32.totalorder %s27_s25, %s27_s25 }
   0x9   :  { %p1923_p3 = scmp.ne.s32.totalorder %s27_s25, %s1922_s10  ;;  %p1928_p5 = scmp.lt.s32.totalorder %s1922_s10, %s1922_s10 }
   0xb   :  { %p1929_p6 = por %p1928_p5, %p1927_p4 }
   0xd   :  { %p1930_p7 = pnand %p1929_p6, %p1923_p3 }
   0xf   :  { %1933 = shalt.err (!%p1930_p7)
}
  0x10   :  { %s1961_s11 = smov 64   ;;  %s1962_s12 = smov 4  }
  0x11   :  { %32 = dma.hbm_to_vmem [thread:$0]  %s2492_s3, 6144, %s27_s25, [#allocation4], %s1961_s11, %s1961_s11, %s1962_s12  }
  0x12   :  { %1956 = dma.done.wait [#allocation4], 6144  }
  0x13   :  { %1957 = vsyncadd [#allocation4], 4294961152  ;;  %v1963_v0 = vmov 0.0   ;;  %v60_v1 = vld [vmem:[%s2490_s1 + $0x8] sm:$0xff]  ;;  %v59_v2 = vld [vmem:[%s2490_s1] sm:$0xff]  ;;  %vm97_vm0 = vcmask 64512   ;;  %v67_v56 = vlaneseq }
  0x14   :  { %210 = vmatprep.mubr.f32.mxu0 %v1963_v0  ;;  %300 = vmatprep.mubr.f32.mxu1 %v1963_v0  ;;  %v2029_v3 = vld [vmem:[%s2489_s0] sm:$0xff]  ;;  %v2034_v4 = vld [vmem:[%s2489_s0 + $0x78] sm:$0xff]  ;;  %v61_v6 = vld [vmem:[%s2490_s1 + $0x10] sm:$0xff]  ;;  %vm1964_vm1 = vmmov 0   ;;  %s1965_s14 = smov [#allocation6]  }
  0x15   :  { %146 = vmatprep.subr.mxu0 %v60_v1  ;;  %1856 = vmatprep.subr.mxu1 %v60_v1  ;;  %v62_v5 = vld [vmem:[%s2490_s1 + $0x18] sm:$0xff]  ;;  %v64_v7 = vld [vmem:[%s2490_s1 + $0x28] sm:$0xff]  ;;  %v63_v9 = vld [vmem:[%s2490_s1 + $0x20] sm:$0xff]  ;;  %v2261_v57 = vshrl.u32 %v67_v56, 7  ;;  %s1529_s15 = sshll.u32 %s1965_s14, 4  ;;  %s1530_s15 = int_to_ptr.vmem [resolvable:$true] %s1529_s15 }
  0x16   :  { %147 = vmatpush1.msra.mxu0 %v59_v2  ;;  %1857 = vmatpush1.msra.mxu1 %v59_v2  ;;  %v2053_v8 = vld [vmem:[%s2489_s0 + $0x8] sm:$0xff]  ;;  %v2066_v10 = vld [vmem:[%s2489_s0 + $0x10] sm:$0xff]  ;;  %v1864_v11 = vld [vmem:[#allocation3 + $0x40] sm:$0xff]   ;;  %s1934_s16 = scalar_lea.vmem %s1530_s15, 16  ;;  %s1938_s17 = scalar_lea.vmem %s1530_s15, 32 }
  0x17   :  { %1538 = vmatmul.mubr.msk.f32.vlgmr.msra.gmra.mrb[0].mxu0 %vm97_vm0, %v2029_v3  ;;  %1553 = vmatmul.mubr.msk.f32.vlgmr.msra.gmra.mrb[0].mxu1 %vm97_vm0, %v2034_v4  ;;  %v1865_v12 = vld [vmem:[#allocation3] sm:$0xff]   ;;  %v1866_v13 = vld [vmem:[#allocation3 + $0x48] sm:$0xff]   ;;  %v2079_v14 = vld [vmem:[%s2489_s0 + $0x18] sm:$0xff]  ;;  %v69_v58 = vsub.s32 0, %v2261_v57  ;;  %v73_v60 = vsub.s32 1, %v2261_v57  ;;  %v77_v61 = vsub.s32 2, %v2261_v57  ;;  %p1935_p8 = scmp.ne.s32.totalorder %s1530_s15, %s1934_s16  ;;  %p1939_p9 = scmp.lt.s32.totalorder %s1530_s15, %s1530_s15 }
  0x18   :  { %307 = vmatprep.subr.mxu1 %v62_v5  ;;  %216 = vmatprep.mubr.f32.mxu0 %v1963_v0  ;;  %v1867_v15 = vld [vmem:[#allocation3 + $0x8] sm:$0xff]   ;;  %v1868_v16 = vld [vmem:[#allocation3 + $0x50] sm:$0xff]   ;;  %v2088_v17 = vld [vmem:[%s2489_s0 + $0x20] sm:$0xff]  ;;  %v81_v62 = vsub.s32 3, %v2261_v57  ;;  %p1940_p10 = scmp.lt.s32.totalorder %s1938_s17, %s1934_s16 }
  0x19   :  { %308 = vmatpush1.msra.mxu1 %v61_v6  ;;  %371 = vmatprep.mubr.f32.mxu1 %v1963_v0  ;;  %v1869_v18 = vld [vmem:[#allocation3 + $0x10] sm:$0xff]   ;;  %v1870_v19 = vld [vmem:[#allocation3 + $0x58] sm:$0xff]   ;;  %v1874_v20 = vld [vmem:[#allocation3 + $0xc0] sm:$0xff]  }
  0x1a   :  { %468 = vmatprep.subr.mxu0 %v64_v7  ;;  %1635 = vmatprep.subr.bf16.mxu1 %v1864_v11  ;;  %v2101_v21 = vld [vmem:[%s2489_s0 + $0x28] sm:$0xff]  ;;  %v1871_v22 = vld [vmem:[#allocation3 + $0x18] sm:$0xff]   ;;  %v1872_v23 = vld [vmem:[#allocation3 + $0x60] sm:$0xff]   ;;  %p1941_p11 = por %p1940_p10, %p1939_p9 }
  0x1b   :  { %1539 = vmatmul.mubr.msk.f32.gmra.mrb[2].mxu0 %vm97_vm0, %v2053_v8  ;;  %1554 = vmatmul.mubr.msk.f32.vlgmr.msra.gmra.mrb[2].mxu1 %vm97_vm0, %v2029_v3  ;;  %v2112_v24 = vld [vmem:[%s2489_s0 + $0x30] sm:$0xff]  ;;  %v1873_v25 = vld [vmem:[#allocation3 + $0x20] sm:$0xff]   ;;  %v1876_v26 = vld [vmem:[#allocation3 + $0x68] sm:$0xff]  }
  0x1c   :  { %469 = vmatpush1.msra.mxu0 %v63_v9  ;;  %222 = vmatprep.mubr.f32.mxu0 %v1963_v0  ;;  %v2123_v27 = vld [vmem:[%s2489_s0 + $0x38] sm:$0xff]  ;;  %v1878_v28 = vld [vmem:[#allocation3 + $0x28] sm:$0xff]   ;;  %v1882_v29 = vld [vmem:[#allocation3 + $0x70] sm:$0xff]   ;;  %p1942_p12 = pnand %p1941_p11, %p1935_p8 }
  0x1d   :  { %377 = vmatprep.mubr.f32.mxu1 %v1963_v0  ;;  %1636 = vmatpush3.bf16.msra.mxu1 %v1865_v12  ;;  %v2128_v30 = vld [vmem:[%s2489_s0 + $0x40] sm:$0xff]  ;;  %v1884_v31 = vld [vmem:[#allocation3 + $0x30] sm:$0xff]   ;;  %v2139_v32 = vld [vmem:[%s2489_s0 + $0x48] sm:$0xff] }
  0x1e   :  { %1637 = vmatprep.subr.bf16.mxu1 %v1866_v13  ;;  %1699 = vmatprep.subr.bf16.mxu0 %v1874_v20  ;;  %v2150_v33 = vld [vmem:[%s2489_s0 + $0x50] sm:$0xff]  ;;  %v2161_v34 = vld [vmem:[%s2489_s0 + $0x58] sm:$0xff]  ;;  %v2178_v35 = vld [vmem:[%s2489_s0 + $0x60] sm:$0xff] }
  0x1f   :  { %1540 = vmatmul.mubr.msk.f32.gmra.mrb[4].mxu0 %vm97_vm0, %v2066_v10  ;;  %1555 = vmatmul.mubr.msk.f32.gmra.mrb[4].mxu1 %vm97_vm0, %v2053_v8  ;;  %v2189_v36 = vld [vmem:[%s2489_s0 + $0x68] sm:$0xff]  ;;  %v2200_v37 = vld [vmem:[%s2489_s0 + $0x70] sm:$0xff]  ;;  %v1875_v38 = vld [vmem:[#allocation3 + $0x80] sm:$0xff]  }
  0x20   :  { %228 = vmatprep.mubr.f32.mxu0 %v1963_v0  ;;  %383 = vmatprep.mubr.f32.mxu1 %v1963_v0  ;;  %v1877_v39 = vld [vmem:[#allocation3 + $0xc8] sm:$0xff]   ;;  %v1880_v41 = vld [vmem:[#allocation3 + $0xd0] sm:$0xff]   ;;  %v1883_v43 = vld [vmem:[#allocation3 + $0xd8] sm:$0xff]  }
  0x21   :  { %1638 = vmatpush3.bf16.msra.mxu1 %v1867_v15  ;;  %v1879_v40 = vld [vmem:[#allocation3 + $0x88] sm:$0xff]   ;;  %v1881_v42 = vld [vmem:[#allocation3 + $0x90] sm:$0xff]   ;;  %v1885_v44 = vld [vmem:[#allocation3 + $0x98] sm:$0xff]  }
  0x22   :  { %1639 = vmatprep.subr.bf16.mxu1 %v1868_v16  ;;  %v1886_v45 = vld [vmem:[#allocation3 + $0xe0] sm:$0xff]   ;;  %v1889_v47 = vld [vmem:[#allocation3 + $0xe8] sm:$0xff]   ;;  %v1888_v49 = vld [vmem:[#allocation3 + $0x78] sm:$0xff]  }
  0x23   :  { %1541 = vmatmul.mubr.msk.f32.gmra.mrb[6].mxu0 %vm97_vm0, %v2079_v14  ;;  %1556 = vmatmul.mubr.msk.f32.gmra.mrb[6].mxu1 %vm97_vm0, %v2066_v10  ;;  %v1887_v46 = vld [vmem:[#allocation3 + $0xa0] sm:$0xff]   ;;  %v1891_v48 = vld [vmem:[#allocation3 + $0xa8] sm:$0xff]   ;;  %v1892_v50 = vld [vmem:[#allocation3 + $0xf0] sm:$0xff]  }
  0x24   :  { %234 = vmatprep.mubr.f32.mxu0 %v1963_v0  ;;  %389 = vmatprep.mubr.f32.mxu1 %v1963_v0  ;;  %v1890_v51 = vld [vmem:[#allocation3 + $0x38] sm:$0xff]   ;;  %v1893_v52 = vld [vmem:[#allocation3 + $0xb0] sm:$0xff]   ;;  %v1895_v55 = vld [vmem:[#allocation3 + $0x140] sm:$0xff]  }
  0x25   :  { %1640 = vmatpush3.bf16.msra.mxu1 %v1869_v18  ;;  %v1894_v53 = vld [vmem:[#allocation3 + $0xf8] sm:$0xff]   ;;  %v2267_v59 = vld [vmem:[%s2491_s2] sm:$0x3f] }
  0x26   :  { %1641 = vmatprep.subr.bf16.mxu1 %v1870_v19  ;;  %v1896_v54 = vld [vmem:[#allocation3 + $0xb8] sm:$0xff]   ;;  %v2273_v63 = vrot.slane %v2267_v59, %v69_v58  ;;  %v2276_v2 = vrot.slane %v2267_v59, %v73_v60  ;;  %v2283_v6 = vrot.slane %v2267_v59, %v77_v61  ;;  %v2286_v7 = vrot.slane %v2267_v59, %v81_v62 }
  0x27   :  { %1542 = vmatmul.mubr.msk.f32.gmra.mrb[8].mxu0 %vm97_vm0, %v2088_v17  ;;  %1557 = vmatmul.mubr.msk.f32.gmra.mrb[8].mxu1 %vm97_vm0, %v2079_v14 }
  0x28   :  { %240 = vmatprep.mubr.f32.mxu0 %v1963_v0  ;;  %395 = vmatprep.mubr.f32.mxu1 %v1963_v0 }
  0x29   :  { %1642 = vmatpush3.bf16.msra.mxu1 %v1871_v22 }
  0x2a   :  { %1643 = vmatprep.subr.bf16.mxu1 %v1872_v23 }
  0x2b   :  { %1543 = vmatmul.mubr.msk.f32.gmra.mrb[10].mxu0 %vm97_vm0, %v2101_v21  ;;  %1558 = vmatmul.mubr.msk.f32.gmra.mrb[10].mxu1 %vm97_vm0, %v2088_v17 }
  0x2c   :  { %246 = vmatprep.mubr.f32.mxu0 %v1963_v0  ;;  %401 = vmatprep.mubr.f32.mxu1 %v1963_v0 }
  0x2d   :  { %1644 = vmatpush3.bf16.msra.mxu1 %v1873_v25 }
  0x2e   :  { %1645 = vmatprep.subr.bf16.mxu1 %v1876_v26 }
  0x2f   :  { %1544 = vmatmul.mubr.msk.f32.gmra.mrb[12].mxu0 %vm97_vm0, %v2112_v24  ;;  %1559 = vmatmul.mubr.msk.f32.gmra.mrb[12].mxu1 %vm97_vm0, %v2101_v21 }
  0x30   :  { %252 = vmatprep.mubr.f32.mxu0 %v1963_v0  ;;  %407 = vmatprep.mubr.f32.mxu1 %v1963_v0 }
  0x31   :  { %1646 = vmatpush3.bf16.msra.mxu1 %v1878_v28 }
  0x32   :  { %1647 = vmatprep.subr.bf16.mxu1 %v1882_v29 }
  0x33   :  { %1545 = vmatmul.mubr.msk.f32.gmra.mrb[14].mxu0 %vm97_vm0, %v2123_v27  ;;  %1560 = vmatmul.mubr.msk.f32.gmra.mrb[14].mxu1 %vm97_vm0, %v2112_v24 }
  0x34   :  { %258 = vmatprep.mubr.f32.mxu0 %v1963_v0  ;;  %413 = vmatprep.mubr.f32.mxu1 %v1963_v0 }
  0x35   :  { %1648 = vmatpush3.bf16.msra.mxu1 %v1884_v31 }
  0x36   :  { %1649 = vmatprep.subr.bf16.mxu1 %v1888_v49 }
  0x37   :  { %1546 = vmatmul.mubr.msk.f32.gmra.mrb[16].mxu0 %vm97_vm0, %v2128_v30  ;;  %1561 = vmatmul.mubr.msk.f32.gmra.mrb[16].mxu1 %vm97_vm0, %v2123_v27 }
  0x38   :  { %264 = vmatprep.mubr.f32.mxu0 %v1963_v0  ;;  %419 = vmatprep.mubr.f32.mxu1 %v1963_v0 }
  0x39   :  { %1650 = vmatpush3.bf16.msra.mxu1 %v1890_v51  ;;  %v1900_v51 = vld [vmem:[#allocation3 + $0x150] sm:$0xff]  }
  0x3a   :  { %1763 = vmatprep.subr.bf16.mxu1 %v1895_v55 }
  0x3b   :  { %1547 = vmatmul.mubr.msk.f32.gmra.mrb[18].mxu0 %vm97_vm0, %v2139_v32  ;;  %1562 = vmatmul.mubr.msk.f32.gmra.mrb[18].mxu1 %vm97_vm0, %v2128_v30 }
  0x3c   :  { %270 = vmatprep.mubr.f32.mxu0 %v1963_v0  ;;  %425 = vmatprep.mubr.f32.mxu1 %v1963_v0 }
  0x3f   :  { %1548 = vmatmul.mubr.msk.f32.gmra.mrb[20].mxu0 %vm97_vm0, %v2150_v33  ;;  %1563 = vmatmul.mubr.msk.f32.gmra.mrb[20].mxu1 %vm97_vm0, %v2139_v32 }
  0x40   :  { %276 = vmatprep.mubr.f32.mxu0 %v1963_v0  ;;  %431 = vmatprep.mubr.f32.mxu1 %v1963_v0 }
  0x43   :  { %1549 = vmatmul.mubr.msk.f32.gmra.mrb[22].mxu0 %vm97_vm0, %v2161_v34  ;;  %1564 = vmatmul.mubr.msk.f32.gmra.mrb[22].mxu1 %vm97_vm0, %v2150_v33 }
  0x44   :  { %282 = vmatprep.mubr.f32.mxu0 %v1963_v0  ;;  %437 = vmatprep.mubr.f32.mxu1 %v1963_v0 }
  0x47   :  { %1550 = vmatmul.mubr.msk.f32.gmra.mrb[24].mxu0 %vm97_vm0, %v2178_v35  ;;  %1565 = vmatmul.mubr.msk.f32.gmra.mrb[24].mxu1 %vm97_vm0, %v2161_v34 }
  0x48   :  { %288 = vmatprep.mubr.f32.mxu0 %v1963_v0  ;;  %443 = vmatprep.mubr.f32.mxu1 %v1963_v0 }
  0x4b   :  { %1551 = vmatmul.mubr.msk.f32.gmra.mrb[26].mxu0 %vm97_vm0, %v2189_v36  ;;  %1566 = vmatmul.mubr.msk.f32.gmra.mrb[26].mxu1 %vm97_vm0, %v2178_v35 }
  0x4c   :  { %294 = vmatprep.mubr.f32.mxu0 %v1963_v0  ;;  %449 = vmatprep.mubr.f32.mxu1 %v1963_v0 }
  0x4f   :  { %1552 = vmatmul.mubr.msk.f32.gmra.mrb[28].mxu0 %vm97_vm0, %v2200_v37  ;;  %1567 = vmatmul.mubr.msk.f32.gmra.mrb[28].mxu1 %vm97_vm0, %v2189_v36 }
  0x50   :  { %455 = vmatprep.mubr.f32.mxu1 %v1963_v0  ;;  %532 = vmatprep.mubr.f32.mxu0 %v1963_v0 }
  0x53   :  { %1568 = vmatmul.mubr.msk.f32.gmra.mrb[30].mxu1 %vm97_vm0, %v2200_v37  ;;  %1570 = vmatmul.mubr.msk.f32.vlgmr.msra.gmra.mrb[30].mxu0 %vm97_vm0, %v2029_v3 }
  0x54   :  { %461 = vmatprep.mubr.f32.mxu1 %v1963_v0  ;;  %538 = vmatprep.mubr.f32.mxu0 %v1963_v0 }
  0x55   :  { %1700 = vmatpush3.bf16.msra.mxu0 %v1875_v38 }
  0x56   :  { %1701 = vmatprep.subr.bf16.mxu0 %v1877_v39 }
  0x57   :  { %1569 = vmatmul.mubr.msk.f32.gmra.mrb[32].mxu1 %vm97_vm0, %v2034_v4  ;;  %1571 = vmatmul.mubr.msk.f32.gmra.mrb[32].mxu0 %vm97_vm0, %v2053_v8 }
  0x58   :  { %544 = vmatprep.mubr.f32.mxu0 %v1963_v0 }
  0x59   :  { %1702 = vmatpush3.bf16.msra.mxu0 %v1879_v40 }
  0x5a   :  { %1703 = vmatprep.subr.bf16.mxu0 %v1880_v41 }
  0x5b   :  { %1572 = vmatmul.mubr.msk.f32.gmra.mrb[34].mxu0 %vm97_vm0, %v2066_v10 }
  0x5c   :  { %550 = vmatprep.mubr.f32.mxu0 %v1963_v0 }
  0x5d   :  { %1704 = vmatpush3.bf16.msra.mxu0 %v1881_v42 }
  0x5e   :  { %1705 = vmatprep.subr.bf16.mxu0 %v1883_v43 }
  0x5f   :  { %1573 = vmatmul.mubr.msk.f32.gmra.mrb[36].mxu0 %vm97_vm0, %v2079_v14 }
  0x60   :  { %556 = vmatprep.mubr.f32.mxu0 %v1963_v0 }
  0x61   :  { %1706 = vmatpush3.bf16.msra.mxu0 %v1885_v44 }
  0x62   :  { %1707 = vmatprep.subr.bf16.mxu0 %v1886_v45 }
  0x63   :  { %1574 = vmatmul.mubr.msk.f32.gmra.mrb[38].mxu0 %vm97_vm0, %v2088_v17 }
  0x64   :  { %562 = vmatprep.mubr.f32.mxu0 %v1963_v0 }
  0x65   :  { %1708 = vmatpush3.bf16.msra.mxu0 %v1887_v46 }
  0x66   :  { %1709 = vmatprep.subr.bf16.mxu0 %v1889_v47 }
  0x67   :  { %1575 = vmatmul.mubr.msk.f32.gmra.mrb[40].mxu0 %vm97_vm0, %v2101_v21 }
  0x68   :  { %568 = vmatprep.mubr.f32.mxu0 %v1963_v0 }
  0x69   :  { %1710 = vmatpush3.bf16.msra.mxu0 %v1891_v48  ;;  %v1899_v48 = vld [vmem:[#allocation3 + $0x108] sm:$0xff]  }
  0x6a   :  { %1711 = vmatprep.subr.bf16.mxu0 %v1892_v50 }
  0x6b   :  { %1576 = vmatmul.mubr.msk.f32.gmra.mrb[42].mxu0 %vm97_vm0, %v2112_v24 }
  0x6c   :  { %574 = vmatprep.mubr.f32.mxu0 %v1963_v0 }
  0x6d   :  { %1712 = vmatpush3.bf16.msra.mxu0 %v1893_v52 }
  0x6e   :  { %1713 = vmatprep.subr.bf16.mxu0 %v1894_v53 }
  0x6f   :  { %1577 = vmatmul.mubr.msk.f32.gmra.mrb[44].mxu0 %vm97_vm0, %v2123_v27 }
  0x70   :  { %580 = vmatprep.mubr.f32.mxu0 %v1963_v0 }
  0x71   :  { %1714 = vmatpush3.bf16.msra.mxu0 %v1896_v54 }
  0x72   :  { %1836 = vmatprep.subr.bf16.mxu0 %v1963_v0 }
  0x73   :  { %1578 = vmatmul.mubr.msk.f32.gmra.mrb[46].mxu0 %vm97_vm0, %v2128_v30 }
  0x74   :  { %586 = vmatprep.mubr.f32.mxu0 %v1963_v0 }
  0x77   :  { %1579 = vmatmul.mubr.msk.f32.gmra.mrb[48].mxu0 %vm97_vm0, %v2139_v32  ;;  %v1897_v32 = vld [vmem:[#allocation3 + $0x100] sm:$0xff]  }
  0x78   :  { %592 = vmatprep.mubr.f32.mxu0 %v1963_v0 }
  0x7b   :  { %1580 = vmatmul.mubr.msk.f32.gmra.mrb[50].mxu0 %vm97_vm0, %v2150_v33 }
  0x7c   :  { %598 = vmatprep.mubr.f32.mxu0 %v1963_v0 }
  0x7f   :  { %1581 = vmatmul.mubr.msk.f32.gmra.mrb[52].mxu0 %vm97_vm0, %v2161_v34 }
  0x80   :  { %604 = vmatprep.mubr.f32.mxu0 %v1963_v0 }
  0x83   :  { %1582 = vmatmul.mubr.msk.f32.gmra.mrb[54].mxu0 %vm97_vm0, %v2178_v35  ;;  %v1898_v35 = vld [vmem:[#allocation3 + $0x148] sm:$0xff]  }
  0x84   :  { %610 = vmatprep.mubr.f32.mxu0 %v1963_v0 }
  0x87   :  { %1583 = vmatmul.mubr.msk.f32.gmra.mrb[56].mxu0 %vm97_vm0, %v2189_v36 }
  0x88   :  { %616 = vmatprep.mubr.f32.mxu0 %v1963_v0 }
  0x8b   :  { %1584 = vmatmul.mubr.msk.f32.gmra.mrb[58].mxu0 %vm97_vm0, %v2200_v37 }
  0x8c   :  { %622 = vmatprep.mubr.f32.mxu0 %v1963_v0 }
  0x8f   :  { %1585 = vmatmul.mubr.msk.f32.gmra.mrb[60].mxu0 %vm97_vm0, %v2034_v4 }
  0xea   :  { %v212_v1 = vpop.f32.mrb[0].mxu0  ;;  %v2278_v3 = vpop.f32.mrb[0].mxu1 }
  0xeb   :  { %v214_v4 = vpop.f32.mrb[1].mxu0  ;;  %v2280_v5 = vpop.f32.mrb[1].mxu1  ;;  %v213_v8 = vadd.f32 %v212_v1, %v2273_v63 }
  0xec   :  { %v215_v9 = vadd.f32 %v214_v4, %v2276_v2 }
  0xed   :  { %v629_v18 = vmax.f32 %v213_v8, 0.0 }
  0xee   :  { %v218_v10 = vpop.f32.mrb[2].mxu0  ;;  %v373_v11 = vpop.f32.mrb[2].mxu1  ;;  %v630_v20 = vmax.f32 %v215_v9, 0.0  ;;  %v1901_v9 = vld [vmem:[#allocation3 + $0x110] sm:$0xff]  }
  0xef   :  { %v219_v12 = vadd.f32 %v218_v10, %v2273_v63  ;;  %v220_v13 = vpop.f32.mrb[3].mxu0  ;;  %v374_v14 = vadd.f32 %v373_v11, %v2283_v6  ;;  %v375_v15 = vpop.f32.mrb[3].mxu1 }
  0xf0   :  { %v221_v16 = vadd.f32 %v220_v13, %v2276_v2  ;;  %v376_v17 = vadd.f32 %v375_v15, %v2286_v7 }
  0xf1   :  { %v635_v19 = vmax.f32 %v219_v12, 0.0  ;;  %v631_v25 = vmax.f32 %v374_v14, 0.0  ;;  %v1902_v12 = vld [vmem:[#allocation3 + $0x158] sm:$0xff]  }
  0xf2   :  { %v636_v21 = vmax.f32 %v221_v16, 0.0  ;;  %v224_v22 = vpop.f32.mrb[4].mxu0  ;;  %v379_v23 = vpop.f32.mrb[4].mxu1  ;;  %v632_v30 = vmax.f32 %v376_v17, 0.0 }
  0xf3   :  { %v725_v24 = vpack.c.bf16 %v635_v19, %v629_v18  ;;  %v380_v26 = vadd.f32 %v379_v23, %v2283_v6  ;;  %v226_v27 = vpop.f32.mrb[5].mxu0  ;;  %v381_v28 = vpop.f32.mrb[5].mxu1  ;;  %v225_v33 = vadd.f32 %v224_v22, %v2273_v63 }
  0xf4   :  { %v726_v29 = vpack.c.bf16 %v636_v21, %v630_v20  ;;  %v382_v31 = vadd.f32 %v381_v28, %v2286_v7  ;;  %v227_v36 = vadd.f32 %v226_v27, %v2276_v2  ;;  %v1904_v28 = vld [vmem:[#allocation3 + $0x160] sm:$0xff]  }
  0xf5   :  { %v637_v34 = vmax.f32 %v380_v26, 0.0  ;;  %v641_v49 = vmax.f32 %v225_v33, 0.0 }
  0xf6   :  { %v638_v37 = vmax.f32 %v382_v31, 0.0  ;;  %v230_v38 = vpop.f32.mrb[6].mxu0  ;;  %1196 = vmatprep.mubr.bf16.mxu1 %v726_v29  ;;  %v385_v39 = vpop.f32.mrb[6].mxu1  ;;  %v642_v52 = vmax.f32 %v227_v36, 0.0 }
  0xf7   :  { %v727_v40 = vpack.c.bf16 %v637_v34, %v631_v25  ;;  %v231_v41 = vadd.f32 %v230_v38, %v2273_v63  ;;  %v232_v42 = vpop.f32.mrb[7].mxu0  ;;  %1197 = vmatmul.mubr.bf16.vlgmr.msra.gmra.mrb[36].mxu1 %v725_v24  ;;  %v386_v43 = vadd.f32 %v385_v39, %v2283_v6  ;;  %v387_v44 = vpop.f32.mrb[7].mxu1  ;;  %v1903_v25 = vld [vmem:[#allocation3 + $0x118] sm:$0xff]  }
  0xf8   :  { %v728_v45 = vpack.c.bf16 %v638_v37, %v632_v30  ;;  %v233_v46 = vadd.f32 %v232_v42, %v2276_v2  ;;  %1764 = vmatpush3.bf16.msra.mxu1 %v1897_v32  ;;  %v388_v47 = vadd.f32 %v387_v44, %v2286_v7  ;;  %v1906_v44 = vld [vmem:[#allocation3 + $0x168] sm:$0xff]  }
  0xf9   :  { %v647_v50 = vmax.f32 %v231_v41, 0.0  ;;  %1765 = vmatprep.subr.bf16.mxu1 %v1898_v35  ;;  %v643_v58 = vmax.f32 %v386_v43, 0.0  ;;  %v1905_v41 = vld [vmem:[#allocation3 + $0x120] sm:$0xff]  }
  0xfa   :  { %v648_v53 = vmax.f32 %v233_v46, 0.0  ;;  %v236_v54 = vpop.f32.mrb[8].mxu0  ;;  %v391_v55 = vpop.f32.mrb[8].mxu1  ;;  %1293 = vmatprep.mubr.bf16.mxu0 %v728_v45  ;;  %v644_v4 = vmax.f32 %v388_v47, 0.0 }
  0xfb   :  { %v731_v56 = vpack.c.bf16 %v647_v50, %v641_v49  ;;  %v392_v60 = vadd.f32 %v391_v55, %v2283_v6  ;;  %v238_v61 = vpop.f32.mrb[9].mxu0  ;;  %v393_v62 = vpop.f32.mrb[9].mxu1  ;;  %1294 = vmatmul.mubr.bf16.vlgmr.msra.gmra.mrb[64].mxu0 %v727_v40  ;;  %v237_v10 = vadd.f32 %v236_v54, %v2273_v63 }
  0xfc   :  { %v732_v1 = vpack.c.bf16 %v648_v53, %v642_v52  ;;  %v394_v8 = vadd.f32 %v393_v62, %v2286_v7  ;;  %1766 = vmatpush3.bf16.msra.mxu1 %v1899_v48  ;;  %v239_v13 = vadd.f32 %v238_v61, %v2276_v2  ;;  %v1908_v62 = vld [vmem:[#allocation3 + $0x170] sm:$0xff]  }
  0xfd   :  { %v649_v11 = vmax.f32 %v392_v60, 0.0  ;;  %1767 = vmatprep.subr.bf16.mxu1 %v1900_v51  ;;  %v653_v26 = vmax.f32 %v237_v10, 0.0 }
  0xfe   :  { %v650_v14 = vmax.f32 %v394_v8, 0.0  ;;  %v242_v15 = vpop.f32.mrb[10].mxu0  ;;  %1204 = vmatprep.mubr.bf16.mxu1 %v732_v1  ;;  %v397_v16 = vpop.f32.mrb[10].mxu1  ;;  %v654_v29 = vmax.f32 %v239_v13, 0.0 }
  0xff   :  { %v733_v17 = vpack.c.bf16 %v649_v11, %v643_v58  ;;  %v243_v18 = vadd.f32 %v242_v15, %v2273_v63  ;;  %v244_v19 = vpop.f32.mrb[11].mxu0  ;;  %1205 = vmatmul.mubr.bf16.gmra.mrb[40].mxu1 %v731_v56  ;;  %v398_v20 = vadd.f32 %v397_v16, %v2283_v6  ;;  %v399_v21 = vpop.f32.mrb[11].mxu1  ;;  %v1907_v58 = vld [vmem:[#allocation3 + $0x128] sm:$0xff]  }
 0x100   :  { %v734_v22 = vpack.c.bf16 %v650_v14, %v644_v4  ;;  %v245_v23 = vadd.f32 %v244_v19, %v2276_v2  ;;  %v400_v24 = vadd.f32 %v399_v21, %v2286_v7  ;;  %1768 = vmatpush3.bf16.msra.mxu1 %v1901_v9  ;;  %v1910_v21 = vld [vmem:[#allocation3 + $0x178] sm:$0xff]  }
 0x101   :  { %v659_v27 = vmax.f32 %v243_v18, 0.0  ;;  %1769 = vmatprep.subr.bf16.mxu1 %v1902_v12  ;;  %v655_v34 = vmax.f32 %v398_v20, 0.0  ;;  %v1909_v18 = vld [vmem:[#allocation3 + $0x130] sm:$0xff]  }
 0x102   :  { %v660_v30 = vmax.f32 %v245_v23, 0.0  ;;  %v248_v31 = vpop.f32.mrb[12].mxu0  ;;  %v403_v32 = vpop.f32.mrb[12].mxu1  ;;  %1301 = vmatprep.mubr.bf16.mxu0 %v734_v22  ;;  %v656_v39 = vmax.f32 %v400_v24, 0.0 }
 0x103   :  { %v737_v33 = vpack.c.bf16 %v659_v27, %v653_v26  ;;  %v404_v35 = vadd.f32 %v403_v32, %v2283_v6  ;;  %v250_v36 = vpop.f32.mrb[13].mxu0  ;;  %v405_v37 = vpop.f32.mrb[13].mxu1  ;;  %1302 = vmatmul.mubr.bf16.gmra.mrb[68].mxu0 %v733_v17  ;;  %v249_v42 = vadd.f32 %v248_v31, %v2273_v63 }
 0x104   :  { %v738_v38 = vpack.c.bf16 %v660_v30, %v654_v29  ;;  %v406_v40 = vadd.f32 %v405_v37, %v2286_v7  ;;  %1770 = vmatpush3.bf16.msra.mxu1 %v1903_v25  ;;  %v251_v45 = vadd.f32 %v250_v36, %v2276_v2 }
 0x105   :  { %v661_v43 = vmax.f32 %v404_v35, 0.0  ;;  %1771 = vmatprep.subr.bf16.mxu1 %v1904_v28  ;;  %v665_v60 = vmax.f32 %v249_v42, 0.0 }
 0x106   :  { %v662_v46 = vmax.f32 %v406_v40, 0.0  ;;  %v254_v47 = vpop.f32.mrb[14].mxu0  ;;  %1212 = vmatprep.mubr.bf16.mxu1 %v738_v38  ;;  %v409_v48 = vpop.f32.mrb[14].mxu1  ;;  %v666_v1 = vmax.f32 %v251_v45, 0.0 }
 0x107   :  { %v739_v49 = vpack.c.bf16 %v661_v43, %v655_v34  ;;  %v255_v50 = vadd.f32 %v254_v47, %v2273_v63  ;;  %v256_v51 = vpop.f32.mrb[15].mxu0  ;;  %1213 = vmatmul.mubr.bf16.gmra.mrb[44].mxu1 %v737_v33  ;;  %v410_v52 = vadd.f32 %v409_v48, %v2283_v6  ;;  %v411_v53 = vpop.f32.mrb[15].mxu1  ;;  %v1911_v34 = vld [vmem:[#allocation3 + $0x138] sm:$0xff]  }
 0x108   :  { %v740_v54 = vpack.c.bf16 %v662_v46, %v656_v39  ;;  %v257_v55 = vadd.f32 %v256_v51, %v2276_v2  ;;  %v412_v56 = vadd.f32 %v411_v53, %v2286_v7  ;;  %1772 = vmatpush3.bf16.msra.mxu1 %v1905_v41 }
 0x109   :  { %v671_v61 = vmax.f32 %v255_v50, 0.0  ;;  %1773 = vmatprep.subr.bf16.mxu1 %v1906_v44  ;;  %v667_v11 = vmax.f32 %v410_v52, 0.0 }
 0x10a   :  { %v672_v4 = vmax.f32 %v257_v55, 0.0  ;;  %v260_v8 = vpop.f32.mrb[16].mxu0  ;;  %v415_v9 = vpop.f32.mrb[16].mxu1  ;;  %1309 = vmatprep.mubr.bf16.mxu0 %v740_v54  ;;  %v668_v16 = vmax.f32 %v412_v56, 0.0 }
 0x10b   :  { %v743_v10 = vpack.c.bf16 %v671_v61, %v665_v60  ;;  %v416_v12 = vadd.f32 %v415_v9, %v2283_v6  ;;  %v262_v13 = vpop.f32.mrb[17].mxu0  ;;  %v417_v14 = vpop.f32.mrb[17].mxu1  ;;  %1310 = vmatmul.mubr.bf16.gmra.mrb[72].mxu0 %v739_v49  ;;  %v261_v19 = vadd.f32 %v260_v8, %v2273_v63 }
 0x10c   :  { %v744_v15 = vpack.c.bf16 %v672_v4, %v666_v1  ;;  %v418_v17 = vadd.f32 %v417_v14, %v2286_v7  ;;  %1774 = vmatpush3.bf16.msra.mxu1 %v1907_v58  ;;  %v263_v22 = vadd.f32 %v262_v13, %v2276_v2 }
 0x10d   :  { %v673_v20 = vmax.f32 %v416_v12, 0.0  ;;  %1775 = vmatprep.subr.bf16.mxu1 %v1908_v62  ;;  %v677_v35 = vmax.f32 %v261_v19, 0.0 }
 0x10e   :  { %v674_v23 = vmax.f32 %v418_v17, 0.0  ;;  %v266_v24 = vpop.f32.mrb[18].mxu0  ;;  %1220 = vmatprep.mubr.bf16.mxu1 %v744_v15  ;;  %v421_v25 = vpop.f32.mrb[18].mxu1  ;;  %v678_v37 = vmax.f32 %v263_v22, 0.0 }
 0x10f   :  { %v745_v26 = vpack.c.bf16 %v673_v20, %v667_v11  ;;  %v267_v27 = vadd.f32 %v266_v24, %v2273_v63  ;;  %v268_v28 = vpop.f32.mrb[19].mxu0  ;;  %1221 = vmatmul.mubr.bf16.gmra.mrb[48].mxu1 %v743_v10  ;;  %v422_v29 = vadd.f32 %v421_v25, %v2283_v6  ;;  %v423_v30 = vpop.f32.mrb[19].mxu1  ;;  %v85_v24 = vsub.s32 4, %v2261_v57 }
 0x110   :  { %v746_v31 = vpack.c.bf16 %v674_v23, %v668_v16  ;;  %v269_v32 = vadd.f32 %v268_v28, %v2276_v2  ;;  %v424_v33 = vadd.f32 %v423_v30, %v2286_v7  ;;  %1776 = vmatpush3.bf16.msra.mxu1 %v1909_v18  ;;  %v89_v25 = vsub.s32 5, %v2261_v57 }
 0x111   :  { %v683_v36 = vmax.f32 %v267_v27, 0.0  ;;  %1777 = vmatprep.subr.bf16.mxu1 %v1910_v21  ;;  %v679_v42 = vmax.f32 %v422_v29, 0.0  ;;  %v305_v27 = vadd.f32 %v2280_v5, %v2276_v2 }
 0x112   :  { %v684_v38 = vmax.f32 %v269_v32, 0.0  ;;  %v272_v39 = vpop.f32.mrb[20].mxu0  ;;  %v427_v40 = vpop.f32.mrb[20].mxu1  ;;  %1317 = vmatprep.mubr.bf16.mxu0 %v746_v31  ;;  %v680_v47 = vmax.f32 %v424_v33, 0.0 }
 0x113   :  { %v749_v41 = vpack.c.bf16 %v683_v36, %v677_v35  ;;  %v428_v43 = vadd.f32 %v427_v40, %v2283_v6  ;;  %v274_v44 = vpop.f32.mrb[21].mxu0  ;;  %v429_v45 = vpop.f32.mrb[21].mxu1  ;;  %1318 = vmatmul.mubr.bf16.gmra.mrb[76].mxu0 %v745_v26  ;;  %v273_v49 = vadd.f32 %v272_v39, %v2273_v63  ;;  %v303_v26 = vadd.f32 %v2278_v3, %v2273_v63 }
 0x114   :  { %v750_v46 = vpack.c.bf16 %v684_v38, %v678_v37  ;;  %v430_v48 = vadd.f32 %v429_v45, %v2286_v7  ;;  %1778 = vmatpush3.bf16.msra.mxu1 %v1911_v34  ;;  %v275_v51 = vadd.f32 %v274_v44, %v2276_v2  ;;  %v2349_v39 = vrot.slane %v2267_v59, %v85_v24 }
 0x115   :  { %v685_v50 = vmax.f32 %v428_v43, 0.0  ;;  %v689_v8 = vmax.f32 %v273_v49, 0.0  ;;  %v2352_v40 = vrot.slane %v2267_v59, %v89_v25 }
 0x116   :  { %v686_v52 = vmax.f32 %v430_v48, 0.0  ;;  %v278_v53 = vpop.f32.mrb[22].mxu0  ;;  %1228 = vmatprep.mubr.bf16.mxu1 %v750_v46  ;;  %v433_v54 = vpop.f32.mrb[22].mxu1  ;;  %v690_v10 = vmax.f32 %v275_v51, 0.0 }
 0x117   :  { %v751_v55 = vpack.c.bf16 %v685_v50, %v679_v42  ;;  %v279_v56 = vadd.f32 %v278_v53, %v2273_v63  ;;  %v280_v58 = vpop.f32.mrb[23].mxu0  ;;  %1229 = vmatmul.mubr.bf16.gmra.mrb[52].mxu1 %v749_v41  ;;  %v434_v60 = vadd.f32 %v433_v54, %v2283_v6  ;;  %v435_v61 = vpop.f32.mrb[23].mxu1  ;;  %v719_v41 = vmax.f32 %v303_v26, 0.0 }
 0x118   :  { %v752_v62 = vpack.c.bf16 %v686_v52, %v680_v47  ;;  %v281_v1 = vadd.f32 %v280_v58, %v2276_v2  ;;  %v436_v4 = vadd.f32 %v435_v61, %v2286_v7  ;;  %v720_v42 = vmax.f32 %v305_v27, 0.0 }
 0x119   :  { %v695_v9 = vmax.f32 %v279_v56, 0.0  ;;  %v691_v15 = vmax.f32 %v434_v60, 0.0 }
 0x11a   :  { %v696_v11 = vmax.f32 %v281_v1, 0.0  ;;  %v284_v12 = vpop.f32.mrb[24].mxu0  ;;  %v439_v13 = vpop.f32.mrb[24].mxu1  ;;  %1325 = vmatprep.mubr.bf16.mxu0 %v752_v62  ;;  %v692_v20 = vmax.f32 %v436_v4, 0.0 }
 0x11b   :  { %v755_v14 = vpack.c.bf16 %v695_v9, %v689_v8  ;;  %v440_v16 = vadd.f32 %v439_v13, %v2283_v6  ;;  %v286_v17 = vpop.f32.mrb[25].mxu0  ;;  %v441_v18 = vpop.f32.mrb[25].mxu1  ;;  %1326 = vmatmul.mubr.bf16.gmra.mrb[80].mxu0 %v751_v55  ;;  %v285_v22 = vadd.f32 %v284_v12, %v2273_v63 }
 0x11c   :  { %v756_v19 = vpack.c.bf16 %v696_v11, %v690_v10  ;;  %v442_v21 = vadd.f32 %v441_v18, %v2286_v7  ;;  %v287_v28 = vadd.f32 %v286_v17, %v2276_v2 }
 0x11d   :  { %v697_v23 = vmax.f32 %v440_v16, 0.0  ;;  %v701_v5 = vmax.f32 %v285_v22, 0.0 }
 0x11e   :  { %v698_v29 = vmax.f32 %v442_v21, 0.0  ;;  %v290_v30 = vpop.f32.mrb[26].mxu0  ;;  %1236 = vmatprep.mubr.bf16.mxu1 %v756_v19  ;;  %v445_v31 = vpop.f32.mrb[26].mxu1  ;;  %v702_v43 = vmax.f32 %v287_v28, 0.0 }
 0x11f   :  { %v757_v32 = vpack.c.bf16 %v697_v23, %v691_v15  ;;  %v291_v33 = vadd.f32 %v290_v30, %v2273_v63  ;;  %v292_v34 = vpop.f32.mrb[27].mxu0  ;;  %1237 = vmatmul.mubr.bf16.gmra.mrb[56].mxu1 %v755_v14  ;;  %v446_v35 = vadd.f32 %v445_v31, %v2283_v6  ;;  %v447_v57 = vpop.f32.mrb[27].mxu1 }
 0x120   :  { %v758_v36 = vpack.c.bf16 %v698_v29, %v692_v20  ;;  %v293_v3 = vadd.f32 %v292_v34, %v2276_v2  ;;  %v448_v37 = vadd.f32 %v447_v57, %v2286_v7 }
 0x121   :  { %v707_v38 = vmax.f32 %v291_v33, 0.0  ;;  %v703_v48 = vmax.f32 %v446_v35, 0.0 }
 0x122   :  { %v708_v44 = vmax.f32 %v293_v3, 0.0  ;;  %v451_v45 = vpop.f32.mrb[28].mxu1  ;;  %1333 = vmatprep.mubr.bf16.mxu0 %v758_v36  ;;  %v296_v46 = vpop.f32.mrb[28].mxu0  ;;  %v704_v54 = vmax.f32 %v448_v37, 0.0 }
 0x123   :  { %v761_v47 = vpack.c.bf16 %v707_v38, %v701_v5  ;;  %v452_v49 = vadd.f32 %v451_v45, %v2283_v6  ;;  %v297_v50 = vadd.f32 %v296_v46, %v2273_v63  ;;  %v453_v51 = vpop.f32.mrb[29].mxu1  ;;  %1334 = vmatmul.mubr.bf16.gmra.mrb[84].mxu0 %v757_v32  ;;  %v298_v52 = vpop.f32.mrb[29].mxu0 }
 0x124   :  { %v762_v53 = vpack.c.bf16 %v708_v44, %v702_v43  ;;  %v454_v59 = vadd.f32 %v453_v51, %v2286_v7  ;;  %v299_v55 = vadd.f32 %v298_v52, %v2276_v2 }
 0x125   :  { %v709_v56 = vmax.f32 %v452_v49, 0.0  ;;  %v713_v58 = vmax.f32 %v297_v50, 0.0 }
 0x126   :  { %v710_v60 = vmax.f32 %v454_v59, 0.0  ;;  %v714_v61 = vmax.f32 %v299_v55, 0.0  ;;  %1244 = vmatprep.mubr.bf16.mxu1 %v762_v53  ;;  %v457_v62 = vpop.f32.mrb[30].mxu1  ;;  %v534_v1 = vpop.f32.mrb[30].mxu0 }
 0x127   :  { %v763_v4 = vpack.c.bf16 %v709_v56, %v703_v48  ;;  %v767_v8 = vpack.c.bf16 %v719_v41, %v713_v58  ;;  %1245 = vmatmul.mubr.bf16.gmra.mrb[60].mxu1 %v761_v47  ;;  %v458_v63 = vadd.f32 %v457_v62, %v2283_v6  ;;  %v535_v9 = vadd.f32 %v534_v1, %v2349_v39  ;;  %v459_v10 = vpop.f32.mrb[31].mxu1  ;;  %v536_v11 = vpop.f32.mrb[31].mxu0 }
 0x128   :  { %v764_v12 = vpack.c.bf16 %v710_v60, %v704_v54  ;;  %v768_v13 = vpack.c.bf16 %v720_v42, %v714_v61  ;;  %v460_v2 = vadd.f32 %v459_v10, %v2286_v7  ;;  %v537_v14 = vadd.f32 %v536_v11, %v2352_v40 }
 0x129   :  { %v715_v17 = vmax.f32 %v458_v63, 0.0  ;;  %v633_v18 = vmax.f32 %v535_v9, 0.0 }
 0x12a   :  { %v463_v15 = vpop.f32.mrb[32].mxu1  ;;  %v540_v16 = vpop.f32.mrb[32].mxu0  ;;  %1341 = vmatprep.mubr.bf16.mxu0 %v764_v12  ;;  %1252 = vmatprep.mubr.bf16.mxu1 %v768_v13  ;;  %v716_v23 = vmax.f32 %v460_v2, 0.0  ;;  %v634_v24 = vmax.f32 %v537_v14, 0.0 }
 0x12b   :  { %v464_v19 = vadd.f32 %v463_v15, %v2283_v6  ;;  %v541_v20 = vadd.f32 %v540_v16, %v2349_v39  ;;  %v465_v21 = vpop.f32.mrb[33].mxu1  ;;  %v542_v22 = vpop.f32.mrb[33].mxu0  ;;  %1342 = vmatmul.mubr.bf16.gmra.mrb[88].mxu0 %v763_v4 }
 0x12c   :  { %v466_v25 = vadd.f32 %v465_v21, %v2286_v7  ;;  %v543_v26 = vadd.f32 %v542_v22, %v2352_v40 }
 0x12d   :  { %v721_v27 = vmax.f32 %v464_v19, 0.0  ;;  %v639_v28 = vmax.f32 %v541_v20, 0.0 }
 0x12e   :  { %v722_v29 = vmax.f32 %v466_v25, 0.0  ;;  %v640_v30 = vmax.f32 %v543_v26, 0.0  ;;  %v546_v31 = vpop.f32.mrb[34].mxu0 }
 0x12f   :  { %v769_v32 = vpack.c.bf16 %v721_v27, %v715_v17  ;;  %v729_v33 = vpack.c.bf16 %v639_v28, %v633_v18  ;;  %1253 = vmatmul.mubr.bf16.gmra.mrb[64].mxu1 %v767_v8  ;;  %v547_v6 = vadd.f32 %v546_v31, %v2349_v39  ;;  %v548_v34 = vpop.f32.mrb[35].mxu0 }
 0x130   :  { %v770_v35 = vpack.c.bf16 %v722_v29, %v716_v23  ;;  %v730_v57 = vpack.c.bf16 %v640_v30, %v634_v24  ;;  %v549_v36 = vadd.f32 %v548_v34, %v2352_v40 }
 0x131   :  { %v645_v7 = vmax.f32 %v547_v6, 0.0 }
 0x132   :  { %v552_v3 = vpop.f32.mrb[36].mxu0  ;;  %1349 = vmatprep.mubr.bf16.mxu0 %v770_v35  ;;  %1390 = vmatprep.mubr.bf16.mxu1 %v730_v57  ;;  %v646_v38 = vmax.f32 %v549_v36, 0.0 }
 0x133   :  { %v553_v37 = vadd.f32 %v552_v3, %v2349_v39  ;;  %v554_v5 = vpop.f32.mrb[37].mxu0  ;;  %1350 = vmatmul.mubr.bf16.gmra.mrb[92].mxu0 %v769_v32 }
 0x134   :  { %v555_v41 = vadd.f32 %v554_v5, %v2352_v40  ;;  %1852 = vmatprep.mubr.msk.bf16.mxu0 %vm1964_vm1, %v1963_v0 }
 0x135   :  { %v651_v42 = vmax.f32 %v553_v37, 0.0 }
 0x136   :  { %v652_v43 = vmax.f32 %v555_v41, 0.0  ;;  %v558_v44 = vpop.f32.mrb[38].mxu0 }
 0x137   :  { %v735_v45 = vpack.c.bf16 %v651_v42, %v645_v7  ;;  %1391 = vmatmul.mubr.bf16.vlgmr.msra.gmra.mrb[68].mxu1 %v729_v33  ;;  %v559_v46 = vadd.f32 %v558_v44, %v2349_v39  ;;  %v560_v47 = vpop.f32.mrb[39].mxu0 }
 0x138   :  { %v736_v48 = vpack.c.bf16 %v652_v43, %v646_v38  ;;  %v561_v49 = vadd.f32 %v560_v47, %v2352_v40 }
 0x139   :  { %v657_v51 = vmax.f32 %v559_v46, 0.0 }
 0x13a   :  { %v564_v50 = vpop.f32.mrb[40].mxu0  ;;  %1398 = vmatprep.mubr.bf16.mxu1 %v736_v48  ;;  %v658_v54 = vmax.f32 %v561_v49, 0.0 }
 0x13b   :  { %v565_v52 = vadd.f32 %v564_v50, %v2349_v39  ;;  %v566_v53 = vpop.f32.mrb[41].mxu0 }
 0x13c   :  { %v567_v59 = vadd.f32 %v566_v53, %v2352_v40 }
 0x13d   :  { %v663_v55 = vmax.f32 %v565_v52, 0.0 }
 0x13e   :  { %v664_v56 = vmax.f32 %v567_v59, 0.0  ;;  %v570_v58 = vpop.f32.mrb[42].mxu0 }
 0x13f   :  { %v741_v60 = vpack.c.bf16 %v663_v55, %v657_v51  ;;  %1399 = vmatmul.mubr.bf16.gmra.mrb[72].mxu1 %v735_v45  ;;  %v571_v61 = vadd.f32 %v570_v58, %v2349_v39  ;;  %v572_v62 = vpop.f32.mrb[43].mxu0 }
 0x140   :  { %v742_v1 = vpack.c.bf16 %v664_v56, %v658_v54  ;;  %v573_v4 = vadd.f32 %v572_v62, %v2352_v40 }
 0x141   :  { %v669_v63 = vmax.f32 %v571_v61, 0.0 }
 0x142   :  { %v576_v8 = vpop.f32.mrb[44].mxu0  ;;  %1406 = vmatprep.mubr.bf16.mxu1 %v742_v1  ;;  %v670_v11 = vmax.f32 %v573_v4, 0.0 }
 0x143   :  { %v577_v9 = vadd.f32 %v576_v8, %v2349_v39  ;;  %v578_v10 = vpop.f32.mrb[45].mxu0 }
 0x144   :  { %v579_v12 = vadd.f32 %v578_v10, %v2352_v40 }
 0x145   :  { %v675_v13 = vmax.f32 %v577_v9, 0.0 }
 0x146   :  { %v676_v2 = vmax.f32 %v579_v12, 0.0  ;;  %v582_v14 = vpop.f32.mrb[46].mxu0 }
 0x147   :  { %v747_v15 = vpack.c.bf16 %v675_v13, %v669_v63  ;;  %1407 = vmatmul.mubr.bf16.gmra.mrb[76].mxu1 %v741_v60  ;;  %v583_v16 = vadd.f32 %v582_v14, %v2349_v39  ;;  %v584_v17 = vpop.f32.mrb[47].mxu0 }
 0x148   :  { %v748_v18 = vpack.c.bf16 %v676_v2, %v670_v11  ;;  %v585_v19 = vadd.f32 %v584_v17, %v2352_v40 }
 0x149   :  { %v681_v21 = vmax.f32 %v583_v16, 0.0 }
 0x14a   :  { %v588_v20 = vpop.f32.mrb[48].mxu0  ;;  %1414 = vmatprep.mubr.bf16.mxu1 %v748_v18  ;;  %v682_v24 = vmax.f32 %v585_v19, 0.0 }
 0x14b   :  { %v589_v22 = vadd.f32 %v588_v20, %v2349_v39  ;;  %v590_v23 = vpop.f32.mrb[49].mxu0 }
 0x14c   :  { %v591_v25 = vadd.f32 %v590_v23, %v2352_v40 }
 0x14d   :  { %v687_v26 = vmax.f32 %v589_v22, 0.0 }
 0x14e   :  { %v688_v27 = vmax.f32 %v591_v25, 0.0  ;;  %v594_v28 = vpop.f32.mrb[50].mxu0 }
 0x14f   :  { %v753_v29 = vpack.c.bf16 %v687_v26, %v681_v21  ;;  %1415 = vmatmul.mubr.bf16.gmra.mrb[80].mxu1 %v747_v15  ;;  %v595_v30 = vadd.f32 %v594_v28, %v2349_v39  ;;  %v596_v31 = vpop.f32.mrb[51].mxu0  ;;  %v2397_v15 = vld [vmem:[%s2493_s4] ss:$0 sm:$0xff] }
 0x150   :  { %v754_v32 = vpack.c.bf16 %v688_v27, %v682_v24  ;;  %v597_v33 = vadd.f32 %v596_v31, %v2352_v40 }
 0x151   :  { %v693_v34 = vmax.f32 %v595_v30, 0.0 }
 0x152   :  { %v600_v6 = vpop.f32.mrb[52].mxu0  ;;  %1422 = vmatprep.mubr.bf16.mxu1 %v754_v32  ;;  %v694_v36 = vmax.f32 %v597_v33, 0.0 }
 0x153   :  { %v601_v35 = vadd.f32 %v600_v6, %v2349_v39  ;;  %v602_v57 = vpop.f32.mrb[53].mxu0 }
 0x154   :  { %v603_v3 = vadd.f32 %v602_v57, %v2352_v40 }
 0x155   :  { %v699_v7 = vmax.f32 %v601_v35, 0.0 }
 0x156   :  { %v700_v37 = vmax.f32 %v603_v3, 0.0  ;;  %v606_v5 = vpop.f32.mrb[54].mxu0 }
 0x157   :  { %v759_v38 = vpack.c.bf16 %v699_v7, %v693_v34  ;;  %1423 = vmatmul.mubr.bf16.gmra.mrb[84].mxu1 %v753_v29  ;;  %v607_v41 = vadd.f32 %v606_v5, %v2349_v39  ;;  %v608_v42 = vpop.f32.mrb[55].mxu0 }
 0x158   :  { %v760_v43 = vpack.c.bf16 %v700_v37, %v694_v36  ;;  %v609_v44 = vadd.f32 %v608_v42, %v2352_v40 }
 0x159   :  { %v705_v46 = vmax.f32 %v607_v41, 0.0 }
 0x15a   :  { %v612_v45 = vpop.f32.mrb[56].mxu0  ;;  %1430 = vmatprep.mubr.bf16.mxu1 %v760_v43  ;;  %v706_v49 = vmax.f32 %v609_v44, 0.0 }
 0x15b   :  { %v613_v47 = vadd.f32 %v612_v45, %v2349_v39  ;;  %v614_v48 = vpop.f32.mrb[57].mxu0 }
 0x15c   :  { %v615_v50 = vadd.f32 %v614_v48, %v2352_v40 }
 0x15d   :  { %v711_v51 = vmax.f32 %v613_v47, 0.0 }
 0x15e   :  { %v712_v52 = vmax.f32 %v615_v50, 0.0  ;;  %v618_v53 = vpop.f32.mrb[58].mxu0 }
 0x15f   :  { %v765_v54 = vpack.c.bf16 %v711_v51, %v705_v46  ;;  %1431 = vmatmul.mubr.bf16.gmra.mrb[88].mxu1 %v759_v38  ;;  %v619_v59 = vadd.f32 %v618_v53, %v2349_v39  ;;  %v620_v55 = vpop.f32.mrb[59].mxu0 }
 0x160   :  { %v766_v56 = vpack.c.bf16 %v712_v52, %v706_v49  ;;  %v621_v58 = vadd.f32 %v620_v55, %v2352_v40 }
 0x161   :  { %v717_v61 = vmax.f32 %v619_v59, 0.0 }
 0x162   :  { %v624_v60 = vpop.f32.mrb[60].mxu0  ;;  %1438 = vmatprep.mubr.bf16.mxu1 %v766_v56  ;;  %v718_v4 = vmax.f32 %v621_v58, 0.0 }
 0x163   :  { %v625_v62 = vadd.f32 %v624_v60, %v2349_v39  ;;  %v626_v1 = vpop.f32.mrb[61].mxu0 }
 0x164   :  { %v627_v8 = vadd.f32 %v626_v1, %v2352_v40 }
 0x165   :  { %v723_v63 = vmax.f32 %v625_v62, 0.0 }
 0x166   :  { %v724_v9 = vmax.f32 %v627_v8, 0.0 }
 0x167   :  { %v771_v10 = vpack.c.bf16 %v723_v63, %v717_v61  ;;  %1439 = vmatmul.mubr.bf16.gmra.mrb[92].mxu1 %v765_v54 }
 0x168   :  { %v772_v11 = vpack.c.bf16 %v724_v9, %v718_v4 }
 0x16a   :  { %1446 = vmatprep.mubr.bf16.mxu1 %v772_v11 }
 0x16f   :  { %1447 = vmatmul.mubr.bf16.gmra.mrb[96].mxu1 %v771_v10 }
 0x1ca   :  { %v1651_v12 = vpop.f32.mrb[36].mxu1 }
 0x1cb   :  { %v1652_v13 = vpop.f32.mrb[37].mxu1 }
 0x1cc   :  { %v1653_v2 = vadd.f32 %v1652_v13, %v1651_v12  ;;  %v1654_v14 = vpop.f32.mrb[38].mxu1 }
 0x1cd   :  { %v1655_v39 = vpop.f32.mrb[39].mxu1 }
 0x1ce   :  { %v1656_v16 = vadd.f32 %v1655_v39, %v1654_v14  ;;  %v1715_v17 = vpop.f32.mrb[64].mxu0  ;;  %v1199_v18 = vadd.f32 %v1653_v2, %v2397_v15 }
 0x1cf   :  { %v1716_v40 = vpop.f32.mrb[65].mxu0 }
 0x1d0   :  { %v1717_v19 = vadd.f32 %v1716_v40, %v1715_v17  ;;  %v1718_v20 = vpop.f32.mrb[66].mxu0  ;;  %v1202_v22 = vadd.f32 %v1656_v16, %v2397_v15 }
 0x1d1   :  { %v1719_v21 = vpop.f32.mrb[67].mxu0 }
 0x1d2   :  { %v2402_v23 = vadd.f32 %v1717_v19, %v1199_v18  ;;  %v1720_v24 = vadd.f32 %v1719_v21, %v1718_v20  ;;  %v1657_v25 = vpop.f32.mrb[40].mxu1 }
 0x1d3   :  { %v1658_v26 = vpop.f32.mrb[41].mxu1 }
 0x1d4   :  { %v2404_v27 = vadd.f32 %v1720_v24, %v1202_v22  ;;  %v1659_v28 = vadd.f32 %v1658_v26, %v1657_v25  ;;  %v1660_v29 = vpop.f32.mrb[42].mxu1 }
 0x1d5   :  { %v1661_v30 = vpop.f32.mrb[43].mxu1 }
 0x1d6   :  { %v1662_v31 = vadd.f32 %v1661_v30, %v1660_v29  ;;  %v1721_v32 = vpop.f32.mrb[68].mxu0  ;;  %v1207_v6 = vadd.f32 %v1659_v28, %v2397_v15 }
 0x1d7   :  { %v1722_v33 = vpop.f32.mrb[69].mxu0 }
 0x1d8   :  { %v1723_v34 = vadd.f32 %v1722_v33, %v1721_v32  ;;  %v1724_v35 = vpop.f32.mrb[70].mxu0  ;;  %v1210_v36 = vadd.f32 %v1662_v31, %v2397_v15 }
 0x1d9   :  { %v1725_v57 = vpop.f32.mrb[71].mxu0 }
 0x1da   :  { %v2408_v3 = vadd.f32 %v1723_v34, %v1207_v6  ;;  %v1726_v7 = vadd.f32 %v1725_v57, %v1724_v35  ;;  %v1663_v37 = vpop.f32.mrb[44].mxu1 }
 0x1db   :  { %v1664_v5 = vpop.f32.mrb[45].mxu1 }
 0x1dc   :  { %v2410_v38 = vadd.f32 %v1726_v7, %v1210_v36  ;;  %v1665_v41 = vadd.f32 %v1664_v5, %v1663_v37  ;;  %v1666_v42 = vpop.f32.mrb[46].mxu1 }
 0x1dd   :  { %v1667_v43 = vpop.f32.mrb[47].mxu1 }
 0x1de   :  { %v1668_v44 = vadd.f32 %v1667_v43, %v1666_v42  ;;  %v1727_v45 = vpop.f32.mrb[72].mxu0  ;;  %v1215_v47 = vadd.f32 %v1665_v41, %v2397_v15 }
 0x1df   :  { %v1728_v46 = vpop.f32.mrb[73].mxu0 }
 0x1e0   :  { %v1729_v48 = vadd.f32 %v1728_v46, %v1727_v45  ;;  %v1730_v49 = vpop.f32.mrb[74].mxu0  ;;  %v1218_v51 = vadd.f32 %v1668_v44, %v2397_v15 }
 0x1e1   :  { %v1731_v50 = vpop.f32.mrb[75].mxu0 }
 0x1e2   :  { %v2414_v52 = vadd.f32 %v1729_v48, %v1215_v47  ;;  %v1732_v53 = vadd.f32 %v1731_v50, %v1730_v49  ;;  %v1669_v54 = vpop.f32.mrb[48].mxu1 }
 0x1e3   :  { %v1670_v59 = vpop.f32.mrb[49].mxu1 }
 0x1e4   :  { %v2416_v55 = vadd.f32 %v1732_v53, %v1218_v51  ;;  %v1671_v56 = vadd.f32 %v1670_v59, %v1669_v54  ;;  %v1672_v58 = vpop.f32.mrb[50].mxu1 }
 0x1e5   :  { %v1673_v60 = vpop.f32.mrb[51].mxu1 }
 0x1e6   :  { %v1674_v61 = vadd.f32 %v1673_v60, %v1672_v58  ;;  %v1733_v62 = vpop.f32.mrb[76].mxu0  ;;  %v1223_v4 = vadd.f32 %v1671_v56, %v2397_v15 }
 0x1e7   :  { %v1734_v1 = vpop.f32.mrb[77].mxu0 }
 0x1e8   :  { %v1735_v8 = vadd.f32 %v1734_v1, %v1733_v62  ;;  %v1736_v63 = vpop.f32.mrb[78].mxu0  ;;  %v1226_v10 = vadd.f32 %v1674_v61, %v2397_v15 }
 0x1e9   :  { %v1737_v9 = vpop.f32.mrb[79].mxu0 }
 0x1ea   :  { %v2420_v11 = vadd.f32 %v1735_v8, %v1223_v4  ;;  %v1738_v12 = vadd.f32 %v1737_v9, %v1736_v63  ;;  %v1675_v13 = vpop.f32.mrb[52].mxu1 }
 0x1eb   :  { %v1676_v2 = vpop.f32.mrb[53].mxu1 }
 0x1ec   :  { %v2422_v14 = vadd.f32 %v1738_v12, %v1226_v10  ;;  %v1677_v39 = vadd.f32 %v1676_v2, %v1675_v13  ;;  %v1678_v16 = vpop.f32.mrb[54].mxu1 }
 0x1ed   :  { %v1679_v17 = vpop.f32.mrb[55].mxu1 }
 0x1ee   :  { %v1680_v40 = vadd.f32 %v1679_v17, %v1678_v16  ;;  %v1739_v18 = vpop.f32.mrb[80].mxu0  ;;  %v1231_v20 = vadd.f32 %v1677_v39, %v2397_v15 }
 0x1ef   :  { %v1740_v19 = vpop.f32.mrb[81].mxu0 }
 0x1f0   :  { %v1741_v21 = vadd.f32 %v1740_v19, %v1739_v18  ;;  %v1742_v22 = vpop.f32.mrb[82].mxu0  ;;  %v1234_v25 = vadd.f32 %v1680_v40, %v2397_v15 }
 0x1f1   :  { %v1743_v24 = vpop.f32.mrb[83].mxu0 }
 0x1f2   :  { %v2426_v26 = vadd.f32 %v1741_v21, %v1231_v20  ;;  %v1744_v28 = vadd.f32 %v1743_v24, %v1742_v22  ;;  %v1681_v29 = vpop.f32.mrb[56].mxu1 }
 0x1f3   :  { %v1682_v30 = vpop.f32.mrb[57].mxu1 }
 0x1f4   :  { %v2428_v31 = vadd.f32 %v1744_v28, %v1234_v25  ;;  %v1683_v32 = vadd.f32 %v1682_v30, %v1681_v29  ;;  %v1684_v33 = vpop.f32.mrb[58].mxu1 }
 0x1f5   :  { %v1685_v6 = vpop.f32.mrb[59].mxu1 }
 0x1f6   :  { %v1686_v34 = vadd.f32 %v1685_v6, %v1684_v33  ;;  %v1745_v35 = vpop.f32.mrb[84].mxu0  ;;  %v1239_v36 = vadd.f32 %v1683_v32, %v2397_v15 }
 0x1f7   :  { %v1746_v57 = vpop.f32.mrb[85].mxu0 }
 0x1f8   :  { %v1747_v7 = vadd.f32 %v1746_v57, %v1745_v35  ;;  %v1748_v37 = vpop.f32.mrb[86].mxu0  ;;  %v1242_v41 = vadd.f32 %v1686_v34, %v2397_v15 }
 0x1f9   :  { %v1749_v5 = vpop.f32.mrb[87].mxu0 }
 0x1fa   :  { %v2432_v42 = vadd.f32 %v1747_v7, %v1239_v36  ;;  %v1750_v43 = vadd.f32 %v1749_v5, %v1748_v37  ;;  %v1687_v44 = vpop.f32.mrb[60].mxu1 }
 0x1fb   :  { %v1688_v45 = vpop.f32.mrb[61].mxu1 }
 0x1fc   :  { %v2434_v46 = vadd.f32 %v1750_v43, %v1242_v41  ;;  %v1689_v47 = vadd.f32 %v1688_v45, %v1687_v44  ;;  %v1690_v48 = vpop.f32.mrb[62].mxu1 }
 0x1fd   :  { %v1691_v49 = vpop.f32.mrb[63].mxu1 }
 0x1fe   :  { %v1692_v50 = vadd.f32 %v1691_v49, %v1690_v48  ;;  %v1751_v51 = vpop.f32.mrb[88].mxu0  ;;  %v1247_v54 = vadd.f32 %v1689_v47, %v2397_v15 }
 0x1ff   :  { %v1752_v53 = vpop.f32.mrb[89].mxu0 }
 0x200   :  { %v1753_v59 = vadd.f32 %v1752_v53, %v1751_v51  ;;  %v1754_v56 = vpop.f32.mrb[90].mxu0  ;;  %v1250_v60 = vadd.f32 %v1692_v50, %v2397_v15 }
 0x201   :  { %v1755_v58 = vpop.f32.mrb[91].mxu0 }
 0x202   :  { %v2438_v61 = vadd.f32 %v1753_v59, %v1247_v54  ;;  %v1756_v62 = vadd.f32 %v1755_v58, %v1754_v56  ;;  %v1693_v1 = vpop.f32.mrb[64].mxu1 }
 0x203   :  { %v1694_v4 = vpop.f32.mrb[65].mxu1 }
 0x204   :  { %v2440_v8 = vadd.f32 %v1756_v62, %v1250_v60  ;;  %v1695_v63 = vadd.f32 %v1694_v4, %v1693_v1  ;;  %v1696_v9 = vpop.f32.mrb[66].mxu1 }
 0x205   :  { %v1697_v10 = vpop.f32.mrb[67].mxu1 }
 0x206   :  { %v1698_v12 = vadd.f32 %v1697_v10, %v1696_v9  ;;  %v1757_v13 = vpop.f32.mrb[92].mxu0  ;;  %v1255_v39 = vadd.f32 %v1695_v63, %v2397_v15 }
 0x207   :  { %v1758_v2 = vpop.f32.mrb[93].mxu0 }
 0x208   :  { %v1759_v16 = vadd.f32 %v1758_v2, %v1757_v13  ;;  %v1760_v17 = vpop.f32.mrb[94].mxu0  ;;  %v1258_v18 = vadd.f32 %v1698_v12, %v2397_v15 }
 0x209   :  { %v1761_v40 = vpop.f32.mrb[95].mxu0 }
 0x20a   :  { %v2444_v19 = vadd.f32 %v1759_v16, %v1255_v39  ;;  %v1762_v20 = vadd.f32 %v1761_v40, %v1760_v17  ;;  %v1779_v21 = vpop.f32.mrb[68].mxu1 }
 0x20b   :  { %v1780_v22 = vpop.f32.mrb[69].mxu1 }
 0x20c   :  { %v2446_v24 = vadd.f32 %v1762_v20, %v1258_v18  ;;  %v1781_v25 = vadd.f32 %v1780_v22, %v1779_v21  ;;  %v1782_v28 = vpop.f32.mrb[70].mxu1 }
 0x20d   :  { %v1783_v29 = vpop.f32.mrb[71].mxu1 }
 0x20e   :  { %v1393_v30 = vadd.f32 %v1781_v25, %v2402_v23  ;;  %v1784_v32 = vadd.f32 %v1783_v29, %v1782_v28 }
 0x210   :  { %v1396_v33 = vadd.f32 %v1784_v32, %v2404_v27  ;;  %v1455_v6 = vmax.f32 %v1393_v30, 0.0 }
 0x212   :  { %v1456_v34 = vmax.f32 %v1396_v33, 0.0  ;;  %v1785_v35 = vpop.f32.mrb[72].mxu1 }
 0x213   :  { %v1786_v57 = vpop.f32.mrb[73].mxu1 }
 0x214   :  { %v1472_v15 = vpack.c.bf16 %v1456_v34, %v1455_v6  ;;  %v1787_v36 = vadd.f32 %v1786_v57, %v1785_v35  ;;  %v1788_v7 = vpop.f32.mrb[74].mxu1 }
 0x215   :  { %v1789_v37 = vpop.f32.mrb[75].mxu1 }
 0x216   :  { %v1401_v5 = vadd.f32 %v1787_v36, %v2408_v3  ;;  %v1790_v41 = vadd.f32 %v1789_v37, %v1788_v7  ;;  %1837 = vmatpush3.bf16.xpose.msra.mxu0 %v1472_v15 }
 0x217   :  { %1838 = vmatprep.subr.bf16.mxu0 %v1963_v0 }
 0x218   :  { %v1404_v43 = vadd.f32 %v1790_v41, %v2410_v38  ;;  %v1457_v23 = vmax.f32 %v1401_v5, 0.0 }
 0x21a   :  { %v1458_v44 = vmax.f32 %v1404_v43, 0.0  ;;  %v1791_v45 = vpop.f32.mrb[76].mxu1 }
 0x21b   :  { %v1792_v27 = vpop.f32.mrb[77].mxu1 }
 0x21c   :  { %v1473_v47 = vpack.c.bf16 %v1458_v44, %v1457_v23  ;;  %v1793_v48 = vadd.f32 %v1792_v27, %v1791_v45  ;;  %v1794_v49 = vpop.f32.mrb[78].mxu1 }
 0x21d   :  { %v1795_v50 = vpop.f32.mrb[79].mxu1 }
 0x21e   :  { %v1409_v51 = vadd.f32 %v1793_v48, %v2414_v52  ;;  %v1796_v53 = vadd.f32 %v1795_v50, %v1794_v49  ;;  %1839 = vmatpush3.bf16.xpose.msra.mxu0 %v1473_v47 }
 0x21f   :  { %1840 = vmatprep.subr.bf16.mxu0 %v1963_v0 }
 0x220   :  { %v1412_v3 = vadd.f32 %v1796_v53, %v2416_v55  ;;  %v1459_v54 = vmax.f32 %v1409_v51, 0.0  ;;  %v1481_v53 = vstv %s2495_s6 }
 0x222   :  { %v1460_v59 = vmax.f32 %v1412_v3, 0.0  ;;  %v1797_v56 = vpop.f32.mrb[80].mxu1 }
 0x223   :  { %v1798_v38 = vpop.f32.mrb[81].mxu1 }
 0x224   :  { %v1474_v58 = vpack.c.bf16 %v1460_v59, %v1459_v54  ;;  %v1799_v60 = vadd.f32 %v1798_v38, %v1797_v56  ;;  %v1800_v62 = vpop.f32.mrb[82].mxu1 }
 0x225   :  { %v1801_v1 = vpop.f32.mrb[83].mxu1 }
 0x226   :  { %v1417_v4 = vadd.f32 %v1799_v60, %v2420_v11  ;;  %v1802_v63 = vadd.f32 %v1801_v1, %v1800_v62  ;;  %1841 = vmatpush3.bf16.xpose.msra.mxu0 %v1474_v58 }
 0x227   :  { %1842 = vmatprep.subr.bf16.mxu0 %v1963_v0 }
 0x228   :  { %v1420_v52 = vadd.f32 %v1802_v63, %v2422_v14  ;;  %v1461_v9 = vmax.f32 %v1417_v4, 0.0 }
 0x22a   :  { %v1462_v10 = vmax.f32 %v1420_v52, 0.0  ;;  %v1803_v12 = vpop.f32.mrb[84].mxu1 }
 0x22b   :  { %v1804_v55 = vpop.f32.mrb[85].mxu1 }
 0x22c   :  { %v1475_v13 = vpack.c.bf16 %v1462_v10, %v1461_v9  ;;  %v1805_v2 = vadd.f32 %v1804_v55, %v1803_v12  ;;  %v1806_v39 = vpop.f32.mrb[86].mxu1 }
 0x22d   :  { %v1807_v16 = vpop.f32.mrb[87].mxu1 }
 0x22e   :  { %v1425_v17 = vadd.f32 %v1805_v2, %v2426_v26  ;;  %v1808_v40 = vadd.f32 %v1807_v16, %v1806_v39  ;;  %1843 = vmatpush3.bf16.xpose.msra.mxu0 %v1475_v13 }
 0x22f   :  { %1844 = vmatprep.subr.bf16.mxu0 %v1963_v0 }
 0x230   :  { %v1428_v11 = vadd.f32 %v1808_v40, %v2428_v31  ;;  %v1463_v18 = vmax.f32 %v1425_v17, 0.0 }
 0x232   :  { %v1464_v20 = vmax.f32 %v1428_v11, 0.0  ;;  %v1809_v21 = vpop.f32.mrb[88].mxu1 }
 0x233   :  { %v1810_v14 = vpop.f32.mrb[89].mxu1 }
 0x234   :  { %v1476_v22 = vpack.c.bf16 %v1464_v20, %v1463_v18  ;;  %v1811_v25 = vadd.f32 %v1810_v14, %v1809_v21  ;;  %v1812_v28 = vpop.f32.mrb[90].mxu1 }
 0x235   :  { %v1813_v29 = vpop.f32.mrb[91].mxu1 }
 0x236   :  { %v1433_v30 = vadd.f32 %v1811_v25, %v2432_v42  ;;  %v1814_v32 = vadd.f32 %v1813_v29, %v1812_v28  ;;  %1845 = vmatpush3.bf16.xpose.msra.mxu0 %v1476_v22 }
 0x237   :  { %1846 = vmatprep.subr.bf16.mxu0 %v1963_v0 }
 0x238   :  { %v1436_v26 = vadd.f32 %v1814_v32, %v2434_v46  ;;  %v1465_v33 = vmax.f32 %v1433_v30, 0.0 }
 0x23a   :  { %v1466_v6 = vmax.f32 %v1436_v26, 0.0  ;;  %v1815_v34 = vpop.f32.mrb[92].mxu1 }
 0x23b   :  { %v1816_v31 = vpop.f32.mrb[93].mxu1 }
 0x23c   :  { %v1477_v35 = vpack.c.bf16 %v1466_v6, %v1465_v33  ;;  %v1817_v57 = vadd.f32 %v1816_v31, %v1815_v34  ;;  %v1818_v15 = vpop.f32.mrb[94].mxu1 }
 0x23d   :  { %v1819_v36 = vpop.f32.mrb[95].mxu1 }
 0x23e   :  { %v1441_v7 = vadd.f32 %v1817_v57, %v2438_v61  ;;  %v1820_v37 = vadd.f32 %v1819_v36, %v1818_v15  ;;  %1847 = vmatpush3.bf16.xpose.msra.mxu0 %v1477_v35 }
 0x23f   :  { %1848 = vmatprep.subr.bf16.mxu0 %v1963_v0 }
 0x240   :  { %v1444_v42 = vadd.f32 %v1820_v37, %v2440_v8  ;;  %v1467_v5 = vmax.f32 %v1441_v7, 0.0  ;;  %v1471_v8 = vld [vmem:[%s2494_s5] sm:$0x1] }
 0x242   :  { %v1468_v41 = vmax.f32 %v1444_v42, 0.0  ;;  %v1821_v43 = vpop.f32.mrb[96].mxu1 }
 0x243   :  { %v1822_v46 = vpop.f32.mrb[97].mxu1 }
 0x244   :  { %v1478_v23 = vpack.c.bf16 %v1468_v41, %v1467_v5  ;;  %v1823_v44 = vadd.f32 %v1822_v46, %v1821_v43  ;;  %v1824_v45 = vpop.f32.mrb[98].mxu1 }
 0x245   :  { %v1825_v27 = vpop.f32.mrb[99].mxu1 }
 0x246   :  { %v1449_v47 = vadd.f32 %v1823_v44, %v2444_v19  ;;  %v1826_v48 = vadd.f32 %v1825_v27, %v1824_v45  ;;  %1849 = vmatpush3.bf16.xpose.msra.mxu0 %v1478_v23 }
 0x247   :  { %1850 = vmatprep.subr.bf16.mxu0 %v1963_v0 }
 0x248   :  { %v1452_v61 = vadd.f32 %v1826_v48, %v2446_v24  ;;  %v1469_v49 = vmax.f32 %v1449_v47, 0.0 }
 0x24a   :  { %v1470_v50 = vmax.f32 %v1452_v61, 0.0 }
 0x24c   :  { %v1479_v51 = vpack.c.bf16 %v1470_v50, %v1469_v49 }
 0x24e   :  { %1851 = vmatpush3.bf16.xpose.msra.mxu0 %v1479_v51 }
 0x255   :  { %1853 = vmatmul.mubr.bf16.vlgmr.msra.gmra.mrb[96].mxu0 %v1471_v8 }
 0x328   :  { %v1516_v19 = vpop.f32.mrb[96].mxu0 }
 0x329   :  { %v1517_v3 = vadd.f32 %v1516_v19, %v1481_v53  ;;  %v1854_v0 = vpop.f32.mrb[97].mxu0 }
 0x32a   :  { %v1519_v24 = vpop.f32.mrb[98].mxu0 }
 0x32b   :  { %1522 = vst [vmem:[#allocation6] sm:$0x1] %v1517_v3  ;;  %v1855_v54 = vpop.f32.mrb[99].mxu0 }
 0x32c   :  { %1945 = shalt.err (!%p1942_p12)
}
 0x32d   :  { %s1946_s6 = scalar_lea.hbm %s2496_s7, 16 }
 0x32e   :  { %p1947_p13 = scmp.ne.s32.totalorder %s2496_s7, %s1946_s6  ;;  %p1950_p0 = scmp.lt.u32.totalorder %s1946_s6, %s2496_s7 }
 0x330   :  { %p1952_p1 = pnand %p1950_p0, %p1947_p13 }
 0x332   :  { %1955 = shalt.err (!%p1952_p1)
}
 0x333   :  { %1532 = dma.vmem_to_hbm [thread:$0]  %s1530_s15, 16, %s2496_s7, [#allocation5]  }
 0x334   :  { %1958 = dma.done.wait [#allocation5], 16  }
 0x335   :  { %1959 = vsyncadd [#allocation5], 4294967280 }
 0x336   :  { %1536 = vsyncpa [#allocation4], 1 }
 0x337   :  { %1537 = vsyncpa [#allocation5], 1 }

</bundles_post_ra>
